<compile_context>
chip_gen: v7x
topology: tpu7x:2x2x1
jax: 0.10.0
libtpu: 0.0.40
codegen_flags: <defaults>
</compile_context>

<pallas_src>
import functools

import jax
import jax.numpy as jnp
from jax.experimental import pallas as pl
from jax.experimental.pallas import tpu as pltpu


# --------------------------------------------------------------------------- #
# Shared tail: ReLU -> layer-2 -> ReLU -> fc(concat[gmf, h2]) -> sigmoid
# --------------------------------------------------------------------------- #
def _ncf_head(h1_pre, gmf, w2_ref, b2_ref, wg_ref, wm_ref, bfc_ref, out_ref):
    # h1_pre: (TB, H1) f32 layer-1 pre-activation (bias + folded BN included)
    # gmf:    (TB, E)  f32
    h1 = jnp.maximum(h1_pre, 0.0)                                  # ReLU (Dropout==id)
    h2 = jnp.dot(h1.astype(jnp.bfloat16), w2_ref[...],
                 preferred_element_type=jnp.float32) + b2_ref[...]
    h2 = jnp.maximum(h2, 0.0)                                      # (TB, H2) f32

    # Final fc over concat([gmf, h2], 1), expressed as two MXU vector-matrix
    # products (contract last dims).  The fc weight rows are padded to 8
    # sublanes in the wrapper, giving a lane-major (8, TB) result; row 0 holds
    # the logits -> fully lane-dense store.
    dn = (((1,), (1,)), ((), ()))                                  # contract last dims
    logits8 = (
        jax.lax.dot_general(wg_ref[...], gmf, dn, preferred_element_type=jnp.float32)
        + jax.lax.dot_general(wm_ref[...], h2, dn, preferred_element_type=jnp.float32)
    )                                                              # (8, TB) f32
    out_ref[...] = jax.nn.sigmoid(logits8[0:1, :] + bfc_ref[...])  # (1, TB)


# --------------------------------------------------------------------------- #
# Fused kernel: in-kernel one-hot MXU gather + MLP + GMF + fc + sigmoid
# --------------------------------------------------------------------------- #
def ncf_fused_kernel(
    idx_ref,    # (TB, F)     int32  flat indices (offsets folded in), streamed
    table_ref,  # (V_pad, E)  bf16   embedding table, VMEM-resident
    w1_ref,     # (F*E, H1)   bf16   layer-1 weight with BN scale folded in
    b1_ref,     # (1, H1)     f32
    w2_ref,     # (H1, H2)    bf16
    b2_ref,     # (1, H2)     f32
    wg_ref,     # (8, E)      f32    fc weights, GMF half (row 0, rest zero)
    wm_ref,     # (8, H2)     f32    fc weights, MLP half (row 0, rest zero)
    bfc_ref,    # (1, 1)      f32
    out_ref,    # (1, TB)     f32    sigmoid(logits), lane-major
    *,
    num_fields,
    embed_dim,
    user_field_idx,
    item_field_idx,
):
    idx = idx_ref[...]                                             # (TB, F) int32
    tb = idx.shape[0]
    v_pad = table_ref.shape[0]
    table = table_ref[...]                                         # (V_pad, E) bf16
    lane = jax.lax.broadcasted_iota(jnp.int32, (tb, v_pad), 1)

    embs = []
    h1_pre = None
    for f in range(num_fields):                                    # static, small F
        # one-hot gather on the MXU: exact selection of (bf16-rounded) rows
        onehot = (lane == idx[:, f:f + 1]).astype(jnp.bfloat16)    # (TB, V_pad)
        emb_f = jnp.dot(onehot, table, preferred_element_type=jnp.float32)  # (TB,E) f32
        embs.append(emb_f)
        # accumulate layer-1 per field: avoids an in-kernel lane concatenation
        contrib = jnp.dot(
            emb_f.astype(jnp.bfloat16),
            w1_ref[f * embed_dim:(f + 1) * embed_dim, :],
            preferred_element_type=jnp.float32,
        )
        h1_pre = contrib if h1_pre is None else h1_pre + contrib
    h1_pre = h1_pre + b1_ref[...]

    gmf = embs[user_field_idx] * embs[item_field_idx]              # (TB, E) f32
    _ncf_head(h1_pre, gmf, w2_ref, b2_ref, wg_ref, wm_ref, bfc_ref, out_ref)


# --------------------------------------------------------------------------- #
# Fallback kernel (large tables): gathered activations streamed in as bf16
# --------------------------------------------------------------------------- #
def ncf_emb_kernel(
    emb_ref,    # (TB, F*E)  bf16  flattened field embeddings, streamed per step
    w1_ref, b1_ref, w2_ref, b2_ref, wg_ref, wm_ref, bfc_ref,
    out_ref,    # (1, TB)    f32
    *,
    user_off,
    item_off,
    embed_dim,
):
    x = emb_ref[...]                                               # (TB, F*E) bf16
    user_x = x[:, user_off:user_off + embed_dim].astype(jnp.float32)
    item_x = x[:, item_off:item_off + embed_dim].astype(jnp.float32)
    gmf = user_x * item_x                                          # (TB, E) f32
    h1_pre = jnp.dot(x, w1_ref[...],
                     preferred_element_type=jnp.float32) + b1_ref[...]
    _ncf_head(h1_pre, gmf, w2_ref, b2_ref, wg_ref, wm_ref, bfc_ref, out_ref)


# --------------------------------------------------------------------------- #
# Wrapper: BN folding, fc split, batch padding, path selection + pallas_call
# --------------------------------------------------------------------------- #
def _round_up(x, m):
    return ((x + m - 1) // m) * m


def ncf_forward(x_idx, params, *, user_field_idx, item_field_idx,
                batch_tile=512, table_vmem_budget_bytes=4 << 20):
    """x_idx: int32 (B, num_fields) raw per-field indices -> (B,) probabilities."""
    B, F = x_idx.shape
    V, E = params["emb_table"].shape
    FE = F * E
    H1 = params["w1"].shape[1]
    H2 = params["w2"].shape[1]

    # batch tile: >=256 rows for MXU utilization, <=batch_tile to stay well
    # under the v7x 32 MiB default scoped-VMEM limit (footprint here < 1 MiB).
    TB = min(batch_tile, _round_up(max(B, 1), 256))
    B_pad = _round_up(B, TB)
    if B_pad != B:
        x_idx = jnp.concatenate(
            [x_idx, jnp.zeros((B_pad - B, F), x_idx.dtype)], axis=0)
    flat_idx = (x_idx + params["offsets"][None, :]).astype(jnp.int32)   # (B_pad, F)

    # --- fold BatchNorm (eval mode) into the Linear weights / biases ----------
    eps = 1e-5
    s1 = params["bn1_gamma"] * jax.lax.rsqrt(params["bn1_var"] + eps)
    w1f = (params["w1"] * s1[None, :]).astype(jnp.bfloat16)
    b1f = ((params["b1"] - params["bn1_mean"]) * s1 + params["bn1_beta"]).reshape(1, H1)
    s2 = params["bn2_gamma"] * jax.lax.rsqrt(params["bn2_var"] + eps)
    w2f = (params["w2"] * s2[None, :]).astype(jnp.bfloat16)
    b2f = ((params["b2"] - params["bn2_mean"]) * s2 + params["bn2_beta"]).reshape(1, H2)

    # --- split fc weight along the concat boundary [gmf (E) | mlp (H2)] -------
    # rows padded to 8 sublanes so the in-kernel matmuls use a native M=8 tile.
    wfc = params["wfc"]
    wg8 = jnp.zeros((8, E), jnp.float32).at[0].set(wfc[:E])
    wm8 = jnp.zeros((8, H2), jnp.float32).at[0].set(wfc[E:])
    bfc = params["bfc"].reshape(1, 1)

    weight_ops = (w1f, b1f, w2f, b2f, wg8, wm8, bfc)
    weight_specs = [                                   # all VMEM-resident (constant maps)
        pl.BlockSpec((FE, H1), lambda i: (0, 0)),
        pl.BlockSpec((1, H1), lambda i: (0, 0)),
        pl.BlockSpec((H1, H2), lambda i: (0, 0)),
        pl.BlockSpec((1, H2), lambda i: (0, 0)),
        pl.BlockSpec((8, E), lambda i: (0, 0)),
        pl.BlockSpec((8, H2), lambda i: (0, 0)),
        pl.BlockSpec((1, 1), lambda i: (0, 0)),
    ]

    V_pad = _round_up(V, 128)
    table_bytes = V_pad * E * 2                        # bf16 table footprint

    if table_bytes <= table_vmem_budget_bytes:
        # fused gather path: only (B, F) int32 index traffic per batch row
        table = jnp.zeros((V_pad, E), jnp.bfloat16).at[:V].set(
            params["emb_table"].astype(jnp.bfloat16))
        kernel = functools.partial(
            ncf_fused_kernel, num_fields=F, embed_dim=E,
            user_field_idx=user_field_idx, item_field_idx=item_field_idx)
        in_specs = [
            pl.BlockSpec((TB, F), lambda i: (i, 0)),       # indices: streamed
            pl.BlockSpec((V_pad, E), lambda i: (0, 0)),    # table: VMEM-resident
        ] + weight_specs
        operands = (flat_idx, table) + weight_ops
    else:
        # TODO(synk): large tables: embedding gather runs as XLA glue outside
        #             the kernel (extra HBM round trip of the gathered rows).
        emb_flat = (jnp.take(params["emb_table"], flat_idx, axis=0)
                    .reshape(B_pad, FE).astype(jnp.bfloat16))
        kernel = functools.partial(
            ncf_emb_kernel, user_off=user_field_idx * E,
            item_off=item_field_idx * E, embed_dim=E)
        in_specs = [pl.BlockSpec((TB, FE), lambda i: (i, 0))] + weight_specs
        operands = (emb_flat,) + weight_ops

    out = pl.pallas_call(
        kernel,
        out_shape=jax.ShapeDtypeStruct((1, B_pad), jnp.float32),
        grid=(B_pad // TB,),
        in_specs=in_specs,
        out_specs=pl.BlockSpec((1, TB), lambda i: (0, i)),     # lane-dense output
        compiler_params=pltpu.CompilerParams(
            dimension_semantics=("parallel",)),
    )(*operands)

    return out[0, :B]                                              # (B,)


# --------------------------------------------------------------------------- #
# Pure-JAX reference (f32) for correctness checking
# --------------------------------------------------------------------------- #
def ncf_reference(x_idx, params, *, user_field_idx, item_field_idx):
    flat_idx = x_idx + params["offsets"][None, :]
    emb = jnp.take(params["emb_table"], flat_idx, axis=0)         # (B, F, E)
    B, F, E = emb.shape
    user_x = emb[:, user_field_idx, :]
    item_x = emb[:, item_field_idx, :]
    h = emb.reshape(B, F * E)
    eps = 1e-5
    s1 = params["bn1_gamma"] / jnp.sqrt(params["bn1_var"] + eps)
    t1 = params["bn1_beta"] - params["bn1_mean"] * s1
    h = jnp.maximum((h @ params["w1"] + params["b1"]) * s1 + t1, 0.0)
    s2 = params["bn2_gamma"] / jnp.sqrt(params["bn2_var"] + eps)
    t2 = params["bn2_beta"] - params["bn2_mean"] * s2
    h = jnp.maximum((h @ params["w2"] + params["b2"]) * s2 + t2, 0.0)
    gmf = user_x * item_x
    z = jnp.concatenate([gmf, h], axis=1)
    logits = z @ params["wfc"] + params["bfc"][0]
    return jax.nn.sigmoid(logits)


# --------------------------------------------------------------------------- #
# Deterministic parameter construction
# --------------------------------------------------------------------------- #
def init_params(key, field_dims, embed_dim, mlp_dims):
    F = len(field_dims)
    in_dim = F * embed_dim
    H1, H2 = mlp_dims
    keys = jax.random.split(key, 8)

    def lin_init(k, shape, fan_in):
        return (jax.random.normal(k, shape, jnp.float32) / jnp.sqrt(fan_in)).astype(
            jnp.float32
        )

    params = {
        "offsets": jnp.array(
            [0] + list(jnp.cumsum(jnp.array(field_dims[:-1])).tolist()), jnp.int32
        ),
        "emb_table": 0.01 * jax.random.normal(
            keys[0], (int(sum(field_dims)), embed_dim), jnp.float32
        ),
        "w1": lin_init(keys[1], (in_dim, H1), in_dim),
        "b1": 0.01 * jax.random.normal(keys[2], (H1,), jnp.float32),
        "bn1_gamma": jnp.ones((H1,), jnp.float32),
        "bn1_beta": jnp.zeros((H1,), jnp.float32),
        "bn1_mean": jnp.zeros((H1,), jnp.float32),
        "bn1_var": jnp.ones((H1,), jnp.float32),
        "w2": lin_init(keys[3], (H1, H2), H1),
        "b2": 0.01 * jax.random.normal(keys[4], (H2,), jnp.float32),
        "bn2_gamma": jnp.ones((H2,), jnp.float32),
        "bn2_beta": jnp.zeros((H2,), jnp.float32),
        "bn2_mean": jnp.zeros((H2,), jnp.float32),
        "bn2_var": jnp.ones((H2,), jnp.float32),
        "wfc": lin_init(keys[5], (embed_dim + H2,), embed_dim + H2),
        "bfc": 0.01 * jax.random.normal(keys[6], (1,), jnp.float32),
    }
    return params


# --------------------------------------------------------------------------- #
if __name__ == "__main__":
    # small, module-consistent shapes
    field_dims = [32, 48]          # [n_users, n_items]
    user_field_idx, item_field_idx = 0, 1
    embed_dim = 16
    mlp_dims = (32, 16)
    batch = 8

    key = jax.random.PRNGKey(0)
    k_param, k_user, k_item = jax.random.split(key, 3)
    params = init_params(k_param, field_dims, embed_dim, mlp_dims)

    # x: int indices of size (batch_size, num_fields)
    x = jnp.stack(
        [
            jax.random.randint(k_user, (batch,), 0, field_dims[0], jnp.int32),
            jax.random.randint(k_item, (batch,), 0, field_dims[1], jnp.int32),
        ],
        axis=1,
    )  # (B, 2) int32

    fwd = jax.jit(
        functools.partial(
            ncf_forward,
            user_field_idx=user_field_idx,
            item_field_idx=item_field_idx,
        )
    )
    out = fwd(x, params)
    out = jax.block_until_ready(out)

    ref = ncf_reference(
        x, params, user_field_idx=user_field_idx, item_field_idx=item_field_idx
    )

    assert out.shape == (batch,)
    assert out.dtype == jnp.float32
    assert bool(jnp.all((out > 0.0) & (out < 1.0)))
    assert bool(jnp.allclose(out, ref, atol=1e-2)), (out, ref)
    print("KERNEL_OK")
</pallas_src>

<mosaic_0001>
module attributes {stable_mosaic.version = 11 : i64} {
  func.func @ncf_fused_kernel(%arg0: i32, %arg1: memref<256x2xi32, #tpu.memory_space<vmem>>, %arg2: memref<128x16xbf16, #tpu.memory_space<vmem>>, %arg3: memref<32x32xbf16, #tpu.memory_space<vmem>>, %arg4: memref<1x32xf32, #tpu.memory_space<vmem>>, %arg5: memref<32x16xbf16, #tpu.memory_space<vmem>>, %arg6: memref<1x16xf32, #tpu.memory_space<vmem>>, %arg7: memref<8x16xf32, #tpu.memory_space<vmem>>, %arg8: memref<8x16xf32, #tpu.memory_space<vmem>>, %arg9: memref<1x1xf32, #tpu.memory_space<vmem>>, %arg10: memref<1x256xf32, #tpu.memory_space<vmem>>) attributes {dimension_semantics = [#tpu.dimension_semantics<parallel>], iteration_bounds = array<i64: 1>, scalar_prefetch = 0 : i64, scratch_operands = 0 : i64, tpu.core_type = #tpu.core_type<tc>, window_params = [{transform_indices = @transform_0, window_bounds = array<i64: 256, 2>}, {pipeline_mode = #tpu.pipeline_mode<synchronous>, transform_indices = @transform_1, window_bounds = array<i64: 128, 16>}, {pipeline_mode = #tpu.pipeline_mode<synchronous>, transform_indices = @transform_2, window_bounds = array<i64: 32, 32>}, {pipeline_mode = #tpu.pipeline_mode<synchronous>, transform_indices = @transform_3, window_bounds = array<i64: 1, 32>}, {pipeline_mode = #tpu.pipeline_mode<synchronous>, transform_indices = @transform_4, window_bounds = array<i64: 32, 16>}, {pipeline_mode = #tpu.pipeline_mode<synchronous>, transform_indices = @transform_5, window_bounds = array<i64: 1, 16>}, {pipeline_mode = #tpu.pipeline_mode<synchronous>, transform_indices = @transform_6, window_bounds = array<i64: 8, 16>}, {pipeline_mode = #tpu.pipeline_mode<synchronous>, transform_indices = @transform_7, window_bounds = array<i64: 8, 16>}, {pipeline_mode = #tpu.pipeline_mode<synchronous>, transform_indices = @transform_8, window_bounds = array<i64: 1, 1>}, {transform_indices = @transform_9, window_bounds = array<i64: 1, 256>}]} {
    %c0 = arith.constant 0 : index
    %c0_0 = arith.constant 0 : index
    %0 = vector.load %arg1[%c0, %c0_0] : memref<256x2xi32, #tpu.memory_space<vmem>>, vector<256x2xi32>
    %c0_1 = arith.constant 0 : index
    %c0_2 = arith.constant 0 : index
    %1 = vector.load %arg2[%c0_1, %c0_2] : memref<128x16xbf16, #tpu.memory_space<vmem>>, vector<128x16xbf16>
    %2 = tpu.iota {dimensions = array<i32: 1>} : vector<256x128xi32>
    %3 = vector.extract_strided_slice %0 {offsets = [0, 0], sizes = [256, 1], strides = [1, 1]} : vector<256x2xi32> to vector<256x1xi32>
    %4 = vector.broadcast %3 : vector<256x1xi32> to vector<256x128xi32>
    %5 = arith.cmpi eq, %2, %4 : vector<256x128xi32>
    %6 = arith.extui %5 : vector<256x128xi1> to vector<256x128xi32>
    %7 = arith.sitofp %6 : vector<256x128xi32> to vector<256x128xf32>
    %8 = arith.truncf %7 : vector<256x128xf32> to vector<256x128xbf16>
    %cst = arith.constant dense<0.000000e+00> : vector<256x16xf32>
    %9 = tpu.matmul %8, %1, %cst {dimension_numbers = #tpu.dot_dimension_numbers<[1], [0], [0], [1], [0, 0, 1, 1], [], []>} : vector<256x128xbf16>, vector<128x16xbf16>, vector<256x16xf32> -> vector<256x16xf32>
    %10 = arith.truncf %9 : vector<256x16xf32> to vector<256x16xbf16>
    %c0_3 = arith.constant 0 : index
    %c0_4 = arith.constant 0 : index
    %11 = vector.load %arg3[%c0_3, %c0_4] : memref<32x32xbf16, #tpu.memory_space<vmem>>, vector<16x32xbf16>
    %cst_5 = arith.constant dense<0.000000e+00> : vector<256x32xf32>
    %12 = tpu.matmul %10, %11, %cst_5 {dimension_numbers = #tpu.dot_dimension_numbers<[1], [0], [0], [1], [0, 0, 1, 1], [], []>} : vector<256x16xbf16>, vector<16x32xbf16>, vector<256x32xf32> -> vector<256x32xf32>
    %13 = vector.extract_strided_slice %0 {offsets = [0, 1], sizes = [256, 1], strides = [1, 1]} : vector<256x2xi32> to vector<256x1xi32>
    %14 = vector.broadcast %13 : vector<256x1xi32> to vector<256x128xi32>
    %15 = arith.cmpi eq, %2, %14 : vector<256x128xi32>
    %16 = arith.extui %15 : vector<256x128xi1> to vector<256x128xi32>
    %17 = arith.sitofp %16 : vector<256x128xi32> to vector<256x128xf32>
    %18 = arith.truncf %17 : vector<256x128xf32> to vector<256x128xbf16>
    %cst_6 = arith.constant dense<0.000000e+00> : vector<256x16xf32>
    %19 = tpu.matmul %18, %1, %cst_6 {dimension_numbers = #tpu.dot_dimension_numbers<[1], [0], [0], [1], [0, 0, 1, 1], [], []>} : vector<256x128xbf16>, vector<128x16xbf16>, vector<256x16xf32> -> vector<256x16xf32>
    %20 = arith.truncf %19 : vector<256x16xf32> to vector<256x16xbf16>
    %c16 = arith.constant 16 : index
    %c0_7 = arith.constant 0 : index
    %21 = vector.load %arg3[%c16, %c0_7] : memref<32x32xbf16, #tpu.memory_space<vmem>>, vector<16x32xbf16>
    %cst_8 = arith.constant dense<0.000000e+00> : vector<256x32xf32>
    %22 = tpu.matmul %20, %21, %cst_8 {dimension_numbers = #tpu.dot_dimension_numbers<[1], [0], [0], [1], [0, 0, 1, 1], [], []>} : vector<256x16xbf16>, vector<16x32xbf16>, vector<256x32xf32> -> vector<256x32xf32>
    %23 = arith.addf %12, %22 : vector<256x32xf32>
    %c0_9 = arith.constant 0 : index
    %c0_10 = arith.constant 0 : index
    %24 = vector.load %arg4[%c0_9, %c0_10] : memref<1x32xf32, #tpu.memory_space<vmem>>, vector<1x32xf32>
    %25 = vector.broadcast %24 : vector<1x32xf32> to vector<256x32xf32>
    %26 = arith.addf %23, %25 : vector<256x32xf32>
    %27 = arith.mulf %9, %19 : vector<256x16xf32>
    %cst_11 = arith.constant 0.000000e+00 : f32
    %28 = vector.broadcast %cst_11 : f32 to vector<256x32xf32>
    %29 = arith.maximumf %26, %28 : vector<256x32xf32>
    %30 = arith.truncf %29 : vector<256x32xf32> to vector<256x32xbf16>
    %c0_12 = arith.constant 0 : index
    %c0_13 = arith.constant 0 : index
    %31 = vector.load %arg5[%c0_12, %c0_13] : memref<32x16xbf16, #tpu.memory_space<vmem>>, vector<32x16xbf16>
    %cst_14 = arith.constant dense<0.000000e+00> : vector<256x16xf32>
    %32 = tpu.matmul %30, %31, %cst_14 {dimension_numbers = #tpu.dot_dimension_numbers<[1], [0], [0], [1], [0, 0, 1, 1], [], []>} : vector<256x32xbf16>, vector<32x16xbf16>, vector<256x16xf32> -> vector<256x16xf32>
    %c0_15 = arith.constant 0 : index
    %c0_16 = arith.constant 0 : index
    %33 = vector.load %arg6[%c0_15, %c0_16] : memref<1x16xf32, #tpu.memory_space<vmem>>, vector<1x16xf32>
    %34 = vector.broadcast %33 : vector<1x16xf32> to vector<256x16xf32>
    %35 = arith.addf %32, %34 : vector<256x16xf32>
    %cst_17 = arith.constant 0.000000e+00 : f32
    %36 = vector.broadcast %cst_17 : f32 to vector<256x16xf32>
    %37 = arith.maximumf %35, %36 : vector<256x16xf32>
    %c0_18 = arith.constant 0 : index
    %c0_19 = arith.constant 0 : index
    %38 = vector.load %arg7[%c0_18, %c0_19] : memref<8x16xf32, #tpu.memory_space<vmem>>, vector<8x16xf32>
    %cst_20 = arith.constant dense<0.000000e+00> : vector<8x256xf32>
    %39 = tpu.matmul %38, %27, %cst_20 {dimension_numbers = #tpu.dot_dimension_numbers<[1], [1], [0], [0], [0, 0, 1, 0], [], []>} : vector<8x16xf32>, vector<256x16xf32>, vector<8x256xf32> -> vector<8x256xf32>
    %c0_21 = arith.constant 0 : index
    %c0_22 = arith.constant 0 : index
    %40 = vector.load %arg8[%c0_21, %c0_22] : memref<8x16xf32, #tpu.memory_space<vmem>>, vector<8x16xf32>
    %cst_23 = arith.constant dense<0.000000e+00> : vector<8x256xf32>
    %41 = tpu.matmul %40, %37, %cst_23 {dimension_numbers = #tpu.dot_dimension_numbers<[1], [1], [0], [0], [0, 0, 1, 0], [], []>} : vector<8x16xf32>, vector<256x16xf32>, vector<8x256xf32> -> vector<8x256xf32>
    %42 = arith.addf %39, %41 : vector<8x256xf32>
    %43 = vector.extract_strided_slice %42 {offsets = [0, 0], sizes = [1, 256], strides = [1, 1]} : vector<8x256xf32> to vector<1x256xf32>
    %c0_24 = arith.constant 0 : index
    %c0_25 = arith.constant 0 : index
    %44 = vector.load %arg9[%c0_24, %c0_25] : memref<1x1xf32, #tpu.memory_space<vmem>>, vector<1x1xf32>
    %45 = vector.broadcast %44 : vector<1x1xf32> to vector<1x256xf32>
    %46 = arith.addf %43, %45 : vector<1x256xf32>
    %47 = arith.negf %46 : vector<1x256xf32>
    %48 = math.exp %47 : vector<1x256xf32>
    %cst_26 = arith.constant 1.000000e+00 : f32
    %49 = vector.broadcast %cst_26 : f32 to vector<1x256xf32>
    %50 = arith.addf %49, %48 : vector<1x256xf32>
    %51 = arith.divf %49, %50 : vector<1x256xf32>
    %c0_27 = arith.constant 0 : index
    %c0_28 = arith.constant 0 : index
    %52 = vector.load %arg10[%c0_27, %c0_28] : memref<1x256xf32, #tpu.memory_space<vmem>>, vector<1x256xf32>
    tpu.vector_store %arg10[%c0_27, %c0_28], %51 {strides = array<i32>} : memref<1x256xf32, #tpu.memory_space<vmem>>, vector<1x256xf32>,
    return
  }
  func.func @transform_0(%arg0: i32) -> (i32, i32) {
    %c0_i32 = arith.constant 0 : i32
    %c0_i32_0 = arith.constant 0 : i32
    return %arg0, %c0_i32 : i32, i32
  }
  func.func @transform_1(%arg0: i32) -> (i32, i32) {
    %c0_i32 = arith.constant 0 : i32
    %c0_i32_0 = arith.constant 0 : i32
    %c0_i32_1 = arith.constant 0 : i32
    return %c0_i32, %c0_i32_0 : i32, i32
  }
  func.func @transform_2(%arg0: i32) -> (i32, i32) {
    %c0_i32 = arith.constant 0 : i32
    %c0_i32_0 = arith.constant 0 : i32
    %c0_i32_1 = arith.constant 0 : i32
    return %c0_i32, %c0_i32_0 : i32, i32
  }
  func.func @transform_3(%arg0: i32) -> (i32, i32) {
    %c0_i32 = arith.constant 0 : i32
    %c0_i32_0 = arith.constant 0 : i32
    %c0_i32_1 = arith.constant 0 : i32
    return %c0_i32, %c0_i32_0 : i32, i32
  }
  func.func @transform_4(%arg0: i32) -> (i32, i32) {
    %c0_i32 = arith.constant 0 : i32
    %c0_i32_0 = arith.constant 0 : i32
    %c0_i32_1 = arith.constant 0 : i32
    return %c0_i32, %c0_i32_0 : i32, i32
  }
  func.func @transform_5(%arg0: i32) -> (i32, i32) {
    %c0_i32 = arith.constant 0 : i32
    %c0_i32_0 = arith.constant 0 : i32
    %c0_i32_1 = arith.constant 0 : i32
    return %c0_i32, %c0_i32_0 : i32, i32
  }
  func.func @transform_6(%arg0: i32) -> (i32, i32) {
    %c0_i32 = arith.constant 0 : i32
    %c0_i32_0 = arith.constant 0 : i32
    %c0_i32_1 = arith.constant 0 : i32
    return %c0_i32, %c0_i32_0 : i32, i32
  }
  func.func @transform_7(%arg0: i32) -> (i32, i32) {
    %c0_i32 = arith.constant 0 : i32
    %c0_i32_0 = arith.constant 0 : i32
    %c0_i32_1 = arith.constant 0 : i32
    return %c0_i32, %c0_i32_0 : i32, i32
  }
  func.func @transform_8(%arg0: i32) -> (i32, i32) {
    %c0_i32 = arith.constant 0 : i32
    %c0_i32_0 = arith.constant 0 : i32
    %c0_i32_1 = arith.constant 0 : i32
    return %c0_i32, %c0_i32_0 : i32, i32
  }
  func.func @transform_9(%arg0: i32) -> (i32, i32) {
    %c0_i32 = arith.constant 0 : i32
    %c0_i32_0 = arith.constant 0 : i32
    return %c0_i32, %arg0 : i32, i32
  }
}

</mosaic_0001>

<bundles_post_ra>
// kernel: ncf_forward.1
= control target key start
LH: loop header
LB: loop body
LE: loop exit
PB: predicated region body
PF: predicated region fallthrough
CT: control target
= control target key end

     0   :  { %v2899_v0 = vmov 1   ;;  %v2900_v42 = vmov 0   ;;  %v3780_v43 = vlaneseq  ;;  %v2901_v51 = vmov 1.0|1.0   ;;  %s3770_s0 = inlined_call_operand.vmem [shape: s32[256,2], index: 0, kind: input, shape index: {}]   ;;  %s3771_s8 = inlined_call_operand.<no memory space> [shape: f32[1,1], index: 8, kind: input, shape index: {}]   ;;  %s3772_s1 = inlined_call_operand.vmem [shape: bf16[128,16], index: 1, kind: input, shape index: {}]   ;;  %s3773_s2 = inlined_call_operand.vmem [shape: bf16[32,32], index: 2, kind: input, shape index: {}]   ;;  %s3774_s4 = inlined_call_operand.vmem [shape: bf16[32,16], index: 4, kind: input, shape index: {}]   ;;  %s3775_s3 = inlined_call_operand.vmem [shape: f32[1,32], index: 3, kind: input, shape index: {}]   ;;  %s3776_s7 = inlined_call_operand.vmem [shape: f32[8,16], index: 7, kind: input, shape index: {}]   ;;  %s3777_s5 = inlined_call_operand.vmem [shape: f32[1,16], index: 5, kind: input, shape index: {}]   ;;  %s3778_s6 = inlined_call_operand.vmem [shape: f32[8,16], index: 6, kind: input, shape index: {}]   ;;  %s3779_s9 = inlined_call_operand.vmem [shape: f32[1,256], index: 9, kind: output, shape index: {}]  }
   0x1   :  { %2876 = vset.pattern.permute.xlu1 %v2899_v0  ;;  %2875 = vset.pattern.permute.xlu0 %v2899_v0  ;;  %v2956_v1 = vld [vmem:[%s3770_s0 + $0x10] sm:$0xff]  ;;  %v2961_v2 = vld [vmem:[%s3770_s0] sm:$0xff]  ;;  %v14_v3 = vstv %s3771_s8  ;;  %v2971_v4 = vld [vmem:[%s3770_s0 + $0x18] sm:$0xff] }
   0x2   :  { %527 = vperm.xlu1 %2876, %v2956_v1   ;;  %521 = vperm.xlu0 %2875, %v2961_v2   ;;  %15 = vst [vmem:[#allocation2] sm:$0x1] %v14_v3  ;;  %v2976_v5 = vld [vmem:[%s3770_s0 + $0x8] sm:$0xff]  ;;  %v2988_v7 = vld [vmem:[%s3770_s0 + $0x20] sm:$0xff]  ;;  %v2995_v8 = vld [vmem:[%s3770_s0 + $0x38] sm:$0xff]  ;;  %v3149_v47 = vand.u32 127, %v3780_v43 }
   0x3   :  { %v2983_v6 = vld [vmem:[%s3770_s0 + $0x28] sm:$0xff]  ;;  %v3000_v9 = vld [vmem:[%s3770_s0 + $0x30] sm:$0xff]  ;;  %v2879_v10 = vld [vmem:[%s3772_s1] sm:$0xff]  }
   0x4   :  { %v2880_v11 = vld [vmem:[%s3772_s1 + $0x8] sm:$0xff]   ;;  %v3018_v13 = vld [vmem:[%s3770_s0 + $0x40] sm:$0xff]  ;;  %2589 = vmatprep.subr.bf16.mxu1 %v2879_v10  ;;  %2541 = vmatprep.subr.bf16.mxu0 %v2879_v10  ;;  %v2881_v14 = vld [vmem:[%s3772_s1 + $0x10] sm:$0xff]  }
   0x5   :  { %v3013_v12 = vld [vmem:[%s3770_s0 + $0x48] sm:$0xff]  ;;  %2590 = vmatpush3.bf16.msra.mxu1 %v2879_v10  ;;  %2542 = vmatpush3.bf16.msra.mxu0 %v2879_v10  ;;  %v3028_v15 = vld [vmem:[%s3770_s0 + $0x58] sm:$0xff]  ;;  %v3033_v16 = vld [vmem:[%s3770_s0 + $0x50] sm:$0xff] }
   0x6   :  { %530 = vperm.xlu1 %2876, %v2971_v4   ;;  %524 = vperm.xlu0 %2875, %v2976_v5   ;;  %v2882_v17 = vld [vmem:[%s3772_s1 + $0x18] sm:$0xff]   ;;  %v3043_v18 = vld [vmem:[%s3770_s0 + $0x68] sm:$0xff]  ;;  %v3048_v19 = vld [vmem:[%s3770_s0 + $0x60] sm:$0xff] }
   0x7   :  { %2591 = vmatprep.subr.bf16.mxu1 %v2880_v11  ;;  %2543 = vmatprep.subr.bf16.mxu0 %v2880_v11  ;;  %v2883_v20 = vld [vmem:[%s3772_s1 + $0x20] sm:$0xff]   ;;  %v3058_v21 = vld [vmem:[%s3770_s0 + $0x78] sm:$0xff]  ;;  %v3063_v22 = vld [vmem:[%s3770_s0 + $0x70] sm:$0xff] }
   0x8   :  { %v2884_v23 = vld [vmem:[%s3772_s1 + $0x28] sm:$0xff]   ;;  %v3078_v25 = vld [vmem:[%s3770_s0 + $0x80] sm:$0xff]  ;;  %v2885_v26 = vld [vmem:[%s3772_s1 + $0x30] sm:$0xff]  }
   0x9   :  { %2592 = vmatpush3.bf16.msra.mxu1 %v2880_v11  ;;  %2544 = vmatpush3.bf16.msra.mxu0 %v2880_v11  ;;  %v3073_v24 = vld [vmem:[%s3770_s0 + $0x88] sm:$0xff]  ;;  %v54_v27 = vld [vmem:[%s3770_s0 + $0x98] sm:$0xff]  ;;  %v53_v28 = vld [vmem:[%s3770_s0 + $0x90] sm:$0xff] }
   0xa   :  { %536 = vperm.xlu1 %2876, %v2983_v6   ;;  %533 = vperm.xlu0 %2875, %v2988_v7   ;;  %v2886_v29 = vld [vmem:[%s3772_s1 + $0x38] sm:$0xff]   ;;  %v56_v30 = vld [vmem:[%s3770_s0 + $0xa8] sm:$0xff]  ;;  %v55_v31 = vld [vmem:[%s3770_s0 + $0xa0] sm:$0xff] }
   0xb   :  { %2593 = vmatprep.subr.bf16.mxu1 %v2881_v14  ;;  %2545 = vmatprep.subr.bf16.mxu0 %v2881_v14  ;;  %v58_v32 = vld [vmem:[%s3770_s0 + $0xb8] sm:$0xff]  ;;  %v57_v33 = vld [vmem:[%s3770_s0 + $0xb0] sm:$0xff]  ;;  %v60_v34 = vld [vmem:[%s3770_s0 + $0xc8] sm:$0xff] }
   0xc   :  { %v59_v35 = vld [vmem:[%s3770_s0 + $0xc0] sm:$0xff]  ;;  %v62_v36 = vld [vmem:[%s3770_s0 + $0xd8] sm:$0xff]  ;;  %v61_v37 = vld [vmem:[%s3770_s0 + $0xd0] sm:$0xff] }
   0xd   :  { %2594 = vmatpush3.bf16.msra.mxu1 %v2881_v14  ;;  %2546 = vmatpush3.bf16.msra.mxu0 %v2881_v14  ;;  %v64_v38 = vld [vmem:[%s3770_s0 + $0xe8] sm:$0xff]  ;;  %v63_v39 = vld [vmem:[%s3770_s0 + $0xe0] sm:$0xff]  ;;  %v66_v40 = vld [vmem:[%s3770_s0 + $0xf8] sm:$0xff] }
   0xe   :  { %542 = vperm.xlu1 %2876, %v2995_v8   ;;  %539 = vperm.xlu0 %2875, %v3000_v9   ;;  %v65_v41 = vld [vmem:[%s3770_s0 + $0xf0] sm:$0xff]  ;;  %v2064_v44 = vld [vmem:[#allocation2] sm:$0x1]  ;;  %v3154_v48 = vld [vmem:[%s3773_s2 + $0x8] sm:$0xff]  }
   0xf   :  { %2595 = vmatprep.subr.bf16.mxu1 %v2882_v17  ;;  %2547 = vmatprep.subr.bf16.mxu0 %v2882_v17 }
  0x11   :  { %2596 = vmatpush3.bf16.msra.mxu1 %v2882_v17  ;;  %2548 = vmatpush3.bf16.msra.mxu0 %v2882_v17 }
  0x12   :  { %548 = vperm.xlu1 %2876, %v3013_v12   ;;  %545 = vperm.xlu0 %2875, %v3018_v13  }
  0x13   :  { %2597 = vmatprep.subr.bf16.mxu1 %v2883_v20  ;;  %2549 = vmatprep.subr.bf16.mxu0 %v2883_v20 }
  0x15   :  { %2598 = vmatpush3.bf16.msra.mxu1 %v2883_v20  ;;  %2550 = vmatpush3.bf16.msra.mxu0 %v2883_v20 }
  0x16   :  { %554 = vperm.xlu1 %2876, %v3028_v15   ;;  %551 = vperm.xlu0 %2875, %v3033_v16  }
  0x17   :  { %2599 = vmatprep.subr.bf16.mxu1 %v2884_v23  ;;  %2551 = vmatprep.subr.bf16.mxu0 %v2884_v23 }
  0x19   :  { %2600 = vmatpush3.bf16.msra.mxu1 %v2884_v23  ;;  %2552 = vmatpush3.bf16.msra.mxu0 %v2884_v23 }
  0x1a   :  { %560 = vperm.xlu1 %2876, %v3043_v18   ;;  %557 = vperm.xlu0 %2875, %v3048_v19  }
  0x1b   :  { %2601 = vmatprep.subr.bf16.mxu1 %v2885_v26  ;;  %2553 = vmatprep.subr.bf16.mxu0 %v2885_v26 }
  0x1d   :  { %2602 = vmatpush3.bf16.msra.mxu1 %v2885_v26  ;;  %2554 = vmatpush3.bf16.msra.mxu0 %v2885_v26 }
  0x1e   :  { %566 = vperm.xlu1 %2876, %v3058_v21   ;;  %563 = vperm.xlu0 %2875, %v3063_v22  }
  0x1f   :  { %2603 = vmatprep.subr.bf16.mxu1 %v2886_v29  ;;  %2555 = vmatprep.subr.bf16.mxu0 %v2886_v29 }
  0x21   :  { %2604 = vmatpush3.bf16.msra.mxu1 %v2886_v29  ;;  %2556 = vmatpush3.bf16.msra.mxu0 %v2886_v29 }
  0x22   :  { %572 = vperm.xlu1 %2876, %v3073_v24   ;;  %569 = vperm.xlu0 %2875, %v3078_v25  }
  0x23   :  { %2637 = vmatprep.subr.bf16.mxu0 %v3154_v48 }
  0x26   :  { %578 = vperm.xlu1 %2876, %v54_v27   ;;  %575 = vperm.xlu0 %2875, %v53_v28  }
  0x2a   :  { %584 = vperm.xlu1 %2876, %v56_v30   ;;  %581 = vperm.xlu0 %2875, %v55_v31  }
  0x2e   :  { %590 = vperm.xlu1 %2876, %v58_v32   ;;  %587 = vperm.xlu0 %2875, %v57_v33  }
  0x32   :  { %596 = vperm.xlu1 %2876, %v60_v34   ;;  %593 = vperm.xlu0 %2875, %v59_v35  }
  0x36   :  { %602 = vperm.xlu1 %2876, %v62_v36   ;;  %599 = vperm.xlu0 %2875, %v61_v37  }
  0x3a   :  { %608 = vperm.xlu1 %2876, %v64_v38   ;;  %605 = vperm.xlu0 %2875, %v63_v39  }
  0x3e   :  { %614 = vperm.xlu1 %2876, %v66_v40   ;;  %611 = vperm.xlu0 %2875, %v65_v41  }
  0x42   :  { %2878 = vset.pattern.permute.xlu1 %v2900_v42  ;;  %2877 = vset.pattern.permute.xlu0 %v2900_v42 }
  0x43   :  { %89 = vperm.xlu1 %2878, %v2976_v5   ;;  %86 = vperm.xlu0 %2877, %v2961_v2  }
  0x47   :  { %92 = vperm.xlu1 %2878, %v2956_v1   ;;  %95 = vperm.xlu0 %2877, %v2971_v4  }
  0x4b   :  { %98 = vperm.xlu1 %2878, %v2988_v7   ;;  %101 = vperm.xlu0 %2877, %v2983_v6  }
  0x4f   :  { %104 = vperm.xlu1 %2878, %v3000_v9   ;;  %107 = vperm.xlu0 %2877, %v2995_v8  }
  0x53   :  { %110 = vperm.xlu1 %2878, %v3018_v13   ;;  %113 = vperm.xlu0 %2877, %v3013_v12  }
  0x57   :  { %116 = vperm.xlu1 %2878, %v3033_v16   ;;  %119 = vperm.xlu0 %2877, %v3028_v15  }
  0x5b   :  { %122 = vperm.xlu1 %2878, %v3048_v19   ;;  %125 = vperm.xlu0 %2877, %v3043_v18  }
  0x5f   :  { %128 = vperm.xlu1 %2878, %v3063_v22   ;;  %131 = vperm.xlu0 %2877, %v3058_v21  }
  0x63   :  { %134 = vperm.xlu1 %2878, %v3078_v25   ;;  %137 = vperm.xlu0 %2877, %v3073_v24  }
  0x67   :  { %140 = vperm.xlu1 %2878, %v53_v28   ;;  %143 = vperm.xlu0 %2877, %v54_v27  }
  0x6b   :  { %146 = vperm.xlu1 %2878, %v55_v31   ;;  %149 = vperm.xlu0 %2877, %v56_v30  }
  0x6f   :  { %152 = vperm.xlu1 %2878, %v57_v33   ;;  %155 = vperm.xlu0 %2877, %v58_v32  }
  0x73   :  { %158 = vperm.xlu1 %2878, %v59_v35   ;;  %161 = vperm.xlu0 %2877, %v60_v34   ;;  %v2888_v34 = vld [vmem:[%s3773_s2] sm:$0xff]  }
  0x77   :  { %164 = vperm.xlu1 %2878, %v61_v37   ;;  %167 = vperm.xlu0 %2877, %v62_v36  }
  0x7b   :  { %170 = vperm.xlu1 %2878, %v63_v39   ;;  %173 = vperm.xlu0 %2877, %v64_v38  }
  0x7f   :  { %176 = vperm.xlu1 %2878, %v65_v41   ;;  %179 = vperm.xlu0 %2877, %v66_v40  }
  0x81   :  { %v528_v45 = vpop.permute.xlu1 %527  ;;  %v522_v46 = vpop.permute.xlu0 %521 }
  0x82   :  { %vm618_vm0 = vcmp.eq.s32.totalorder %v3149_v47, %v528_v45  ;;  %vm616_vm3 = vcmp.eq.s32.totalorder %v3149_v47, %v522_v46 }
  0x83   :  { %2067 = vperm.xlu1 %2878, %v2064_v44  }
  0x85   :  { %v531_v49 = vpop.permute.xlu1 %530  ;;  %v525_v50 = vpop.permute.xlu0 %524 }
  0x86   :  { %vm619_vm1 = vcmp.eq.s32.totalorder %v3149_v47, %v531_v49  ;;  %vm617_vm2 = vcmp.eq.s32.totalorder %v3149_v47, %v525_v50 }
  0x87   :  { %vm2221_vm4 = vmpackc.low %vm619_vm1, %vm618_vm0 }
  0x88   :  { %vm2219_vm5 = vmpackc.low %vm617_vm2, %vm616_vm3 }
  0x89   :  { %2605 = vmatprep.mubr.msk.bf16.mxu1 %vm2219_vm5, %v2901_v51  ;;  %v537_v52 = vpop.permute.xlu1 %536  ;;  %v534_v53 = vpop.permute.xlu0 %533 }
  0x8a   :  { %vm621_vm6 = vcmp.eq.s32.totalorder %v3149_v47, %v537_v52  ;;  %2606 = vmatmul.mubr.msk.bf16.vlgmr.msra.gmra.mrb[0].mxu1 %vm2221_vm4, %v2901_v51  ;;  %vm620_vm7 = vcmp.eq.s32.totalorder %v3149_v47, %v534_v53  ;;  %v2889_v53 = vld [vmem:[%s3774_s4] sm:$0xff]  }
  0x8b   :  { %vm2223_vm8 = vmpackc.low %vm621_vm6, %vm620_vm7  ;;  %2705 = vmatprep.subr.bf16.mxu1 %v2889_v53 }
  0x8c   :  { %2609 = vmatprep.mubr.msk.bf16.mxu1 %vm2223_vm8, %v2901_v51  ;;  %2706 = vmatpush3.bf16.msra.mxu1 %v2889_v53 }
  0x8d   :  { %v543_v54 = vpop.permute.xlu1 %542  ;;  %v540_v55 = vpop.permute.xlu0 %539 }
  0x8e   :  { %vm623_vm9 = vcmp.eq.s32.totalorder %v3149_v47, %v543_v54  ;;  %vm622_vm10 = vcmp.eq.s32.totalorder %v3149_v47, %v540_v55  ;;  %v2890_v55 = vld [vmem:[%s3774_s4 + $0x8] sm:$0xff]  }
  0x8f   :  { %vm2225_vm11 = vmpackc.low %vm623_vm9, %vm622_vm10  ;;  %2707 = vmatprep.subr.bf16.mxu1 %v2890_v55 }
  0x90   :  { %2708 = vmatpush3.bf16.msra.mxu1 %v2890_v55 }
  0x91   :  { %v549_v56 = vpop.permute.xlu1 %548  ;;  %v546_v57 = vpop.permute.xlu0 %545 }
  0x92   :  { %vm625_vm12 = vcmp.eq.s32.totalorder %v3149_v47, %v549_v56  ;;  %2610 = vmatmul.mubr.msk.bf16.gmra.mrb[4].mxu1 %vm2225_vm11, %v2901_v51  ;;  %vm624_vm13 = vcmp.eq.s32.totalorder %v3149_v47, %v546_v57 }
  0x93   :  { %vm2227_vm14 = vmpackc.low %vm625_vm12, %vm624_vm13 }
  0x94   :  { %2613 = vmatprep.mubr.msk.bf16.mxu1 %vm2227_vm14, %v2901_v51 }
  0x95   :  { %v555_v58 = vpop.permute.xlu1 %554  ;;  %v552_v59 = vpop.permute.xlu0 %551 }
  0x96   :  { %vm627_vm15 = vcmp.eq.s32.totalorder %v3149_v47, %v555_v58  ;;  %vm626_vm0 = vcmp.eq.s32.totalorder %v3149_v47, %v552_v59 }
  0x97   :  { %vm2229_vm1 = vmpackc.low %vm627_vm15, %vm626_vm0 }
  0x99   :  { %v561_v60 = vpop.permute.xlu1 %560  ;;  %v558_v61 = vpop.permute.xlu0 %557 }
  0x9a   :  { %vm629_vm2 = vcmp.eq.s32.totalorder %v3149_v47, %v561_v60  ;;  %2614 = vmatmul.mubr.msk.bf16.gmra.mrb[8].mxu1 %vm2229_vm1, %v2901_v51  ;;  %vm628_vm3 = vcmp.eq.s32.totalorder %v3149_v47, %v558_v61 }
  0x9b   :  { %vm2231_vm4 = vmpackc.low %vm629_vm2, %vm628_vm3 }
  0x9c   :  { %2617 = vmatprep.mubr.msk.bf16.mxu1 %vm2231_vm4, %v2901_v51 }
  0x9d   :  { %v567_v62 = vpop.permute.xlu1 %566  ;;  %v564_v63 = vpop.permute.xlu0 %563 }
  0x9e   :  { %vm631_vm5 = vcmp.eq.s32.totalorder %v3149_v47, %v567_v62  ;;  %vm630_vm6 = vcmp.eq.s32.totalorder %v3149_v47, %v564_v63 }
  0x9f   :  { %vm2233_vm7 = vmpackc.low %vm631_vm5, %vm630_vm6 }
  0xa1   :  { %v573_v0 = vpop.permute.xlu1 %572  ;;  %v570_v1 = vpop.permute.xlu0 %569 }
  0xa2   :  { %vm633_vm8 = vcmp.eq.s32.totalorder %v3149_v47, %v573_v0  ;;  %2618 = vmatmul.mubr.msk.bf16.gmra.mrb[12].mxu1 %vm2233_vm7, %v2901_v51  ;;  %vm632_vm9 = vcmp.eq.s32.totalorder %v3149_v47, %v570_v1 }
  0xa3   :  { %vm2235_vm10 = vmpackc.low %vm633_vm8, %vm632_vm9 }
  0xa4   :  { %2621 = vmatprep.mubr.msk.bf16.mxu1 %vm2235_vm10, %v2901_v51 }
  0xa5   :  { %v579_v2 = vpop.permute.xlu1 %578  ;;  %v576_v3 = vpop.permute.xlu0 %575 }
  0xa6   :  { %vm635_vm11 = vcmp.eq.s32.totalorder %v3149_v47, %v579_v2  ;;  %vm634_vm12 = vcmp.eq.s32.totalorder %v3149_v47, %v576_v3 }
  0xa7   :  { %vm2237_vm13 = vmpackc.low %vm635_vm11, %vm634_vm12 }
  0xa9   :  { %v585_v4 = vpop.permute.xlu1 %584  ;;  %v582_v5 = vpop.permute.xlu0 %581 }
  0xaa   :  { %vm637_vm14 = vcmp.eq.s32.totalorder %v3149_v47, %v585_v4  ;;  %2622 = vmatmul.mubr.msk.bf16.gmra.mrb[16].mxu1 %vm2237_vm13, %v2901_v51  ;;  %vm636_vm15 = vcmp.eq.s32.totalorder %v3149_v47, %v582_v5 }
  0xab   :  { %vm2239_vm0 = vmpackc.low %vm637_vm14, %vm636_vm15 }
  0xac   :  { %2625 = vmatprep.mubr.msk.bf16.mxu1 %vm2239_vm0, %v2901_v51 }
  0xad   :  { %v591_v6 = vpop.permute.xlu1 %590  ;;  %v588_v7 = vpop.permute.xlu0 %587 }
  0xae   :  { %vm639_vm1 = vcmp.eq.s32.totalorder %v3149_v47, %v591_v6  ;;  %vm638_vm2 = vcmp.eq.s32.totalorder %v3149_v47, %v588_v7 }
  0xaf   :  { %vm2241_vm3 = vmpackc.low %vm639_vm1, %vm638_vm2 }
  0xb1   :  { %v597_v8 = vpop.permute.xlu1 %596  ;;  %v594_v9 = vpop.permute.xlu0 %593 }
  0xb2   :  { %vm641_vm4 = vcmp.eq.s32.totalorder %v3149_v47, %v597_v8  ;;  %2626 = vmatmul.mubr.msk.bf16.gmra.mrb[20].mxu1 %vm2241_vm3, %v2901_v51  ;;  %vm640_vm5 = vcmp.eq.s32.totalorder %v3149_v47, %v594_v9 }
  0xb3   :  { %vm2243_vm6 = vmpackc.low %vm641_vm4, %vm640_vm5 }
  0xb4   :  { %2629 = vmatprep.mubr.msk.bf16.mxu1 %vm2243_vm6, %v2901_v51 }
  0xb5   :  { %v603_v10 = vpop.permute.xlu1 %602  ;;  %v600_v11 = vpop.permute.xlu0 %599 }
  0xb6   :  { %vm643_vm7 = vcmp.eq.s32.totalorder %v3149_v47, %v603_v10  ;;  %vm642_vm8 = vcmp.eq.s32.totalorder %v3149_v47, %v600_v11 }
  0xb7   :  { %vm2245_vm9 = vmpackc.low %vm643_vm7, %vm642_vm8 }
  0xb9   :  { %v609_v12 = vpop.permute.xlu1 %608  ;;  %v606_v13 = vpop.permute.xlu0 %605 }
  0xba   :  { %vm645_vm10 = vcmp.eq.s32.totalorder %v3149_v47, %v609_v12  ;;  %2630 = vmatmul.mubr.msk.bf16.gmra.mrb[24].mxu1 %vm2245_vm9, %v2901_v51  ;;  %vm644_vm11 = vcmp.eq.s32.totalorder %v3149_v47, %v606_v13 }
  0xbb   :  { %vm2247_vm12 = vmpackc.low %vm645_vm10, %vm644_vm11 }
  0xbc   :  { %2633 = vmatprep.mubr.msk.bf16.mxu1 %vm2247_vm12, %v2901_v51 }
  0xbd   :  { %v615_v14 = vpop.permute.xlu1 %614  ;;  %v612_v15 = vpop.permute.xlu0 %611 }
  0xbe   :  { %vm647_vm13 = vcmp.eq.s32.totalorder %v3149_v47, %v615_v14  ;;  %vm646_vm14 = vcmp.eq.s32.totalorder %v3149_v47, %v612_v15 }
  0xbf   :  { %vm2249_vm15 = vmpackc.low %vm647_vm13, %vm646_vm14 }
  0xc2   :  { %2634 = vmatmul.mubr.msk.bf16.gmra.mrb[28].mxu1 %vm2249_vm15, %v2901_v51  ;;  %v90_v16 = vpop.permute.xlu1 %89  ;;  %v87_v17 = vpop.permute.xlu0 %86 }
  0xc3   :  { %vm182_vm0 = vcmp.eq.s32.totalorder %v3149_v47, %v90_v16  ;;  %vm181_vm1 = vcmp.eq.s32.totalorder %v3149_v47, %v87_v17 }
  0xc4   :  { %vm2155_vm2 = vmpackc.low %vm182_vm0, %vm181_vm1 }
  0xc5   :  { %2557 = vmatprep.mubr.msk.bf16.mxu0 %vm2155_vm2, %v2901_v51 }
  0xc6   :  { %v93_v18 = vpop.permute.xlu1 %92  ;;  %v96_v19 = vpop.permute.xlu0 %95 }
  0xc7   :  { %vm183_vm3 = vcmp.eq.s32.totalorder %v3149_v47, %v93_v18  ;;  %vm184_vm4 = vcmp.eq.s32.totalorder %v3149_v47, %v96_v19 }
  0xc8   :  { %vm2157_vm5 = vmpackc.low %vm184_vm4, %vm183_vm3 }
  0xc9   :  { %2558 = vmatmul.mubr.msk.bf16.vlgmr.msra.gmra.mrb[0].mxu0 %vm2157_vm5, %v2901_v51 }
  0xca   :  { %v99_v20 = vpop.permute.xlu1 %98  ;;  %v102_v21 = vpop.permute.xlu0 %101  ;;  %2638 = vmatpush3.bf16.msra.mxu0 %v3154_v48 }
  0xcb   :  { %vm185_vm6 = vcmp.eq.s32.totalorder %v3149_v47, %v99_v20  ;;  %vm186_vm7 = vcmp.eq.s32.totalorder %v3149_v47, %v102_v21  ;;  %2671 = vmatprep.subr.bf16.mxu0 %v2888_v34 }
  0xcc   :  { %vm2159_vm8 = vmpackc.low %vm186_vm7, %vm185_vm6 }
  0xcd   :  { %2561 = vmatprep.mubr.msk.bf16.mxu0 %vm2159_vm8, %v2901_v51 }
  0xce   :  { %v105_v22 = vpop.permute.xlu1 %104  ;;  %v108_v23 = vpop.permute.xlu0 %107 }
  0xcf   :  { %vm187_vm9 = vcmp.eq.s32.totalorder %v3149_v47, %v105_v22  ;;  %vm188_vm10 = vcmp.eq.s32.totalorder %v3149_v47, %v108_v23 }
  0xd0   :  { %vm2161_vm11 = vmpackc.low %vm188_vm10, %vm187_vm9 }
  0xd1   :  { %2562 = vmatmul.mubr.msk.bf16.gmra.mrb[4].mxu0 %vm2161_vm11, %v2901_v51 }
  0xd2   :  { %v111_v24 = vpop.permute.xlu1 %110  ;;  %v114_v25 = vpop.permute.xlu0 %113 }
  0xd3   :  { %vm189_vm12 = vcmp.eq.s32.totalorder %v3149_v47, %v111_v24  ;;  %vm190_vm13 = vcmp.eq.s32.totalorder %v3149_v47, %v114_v25 }
  0xd4   :  { %vm2163_vm14 = vmpackc.low %vm190_vm13, %vm189_vm12 }
  0xd5   :  { %2565 = vmatprep.mubr.msk.bf16.mxu0 %vm2163_vm14, %v2901_v51 }
  0xd6   :  { %v117_v26 = vpop.permute.xlu1 %116  ;;  %v120_v27 = vpop.permute.xlu0 %119 }
  0xd7   :  { %vm191_vm15 = vcmp.eq.s32.totalorder %v3149_v47, %v117_v26  ;;  %vm192_vm0 = vcmp.eq.s32.totalorder %v3149_v47, %v120_v27 }
  0xd8   :  { %vm2165_vm1 = vmpackc.low %vm192_vm0, %vm191_vm15 }
  0xd9   :  { %2566 = vmatmul.mubr.msk.bf16.gmra.mrb[8].mxu0 %vm2165_vm1, %v2901_v51 }
  0xda   :  { %v123_v28 = vpop.permute.xlu1 %122  ;;  %v126_v29 = vpop.permute.xlu0 %125 }
  0xdb   :  { %vm193_vm2 = vcmp.eq.s32.totalorder %v3149_v47, %v123_v28  ;;  %vm194_vm3 = vcmp.eq.s32.totalorder %v3149_v47, %v126_v29 }
  0xdc   :  { %vm2167_vm4 = vmpackc.low %vm194_vm3, %vm193_vm2 }
  0xdd   :  { %2569 = vmatprep.mubr.msk.bf16.mxu0 %vm2167_vm4, %v2901_v51 }
  0xde   :  { %v129_v30 = vpop.permute.xlu1 %128  ;;  %v132_v31 = vpop.permute.xlu0 %131 }
  0xdf   :  { %vm195_vm5 = vcmp.eq.s32.totalorder %v3149_v47, %v129_v30  ;;  %vm196_vm6 = vcmp.eq.s32.totalorder %v3149_v47, %v132_v31 }
  0xe0   :  { %vm2169_vm7 = vmpackc.low %vm196_vm6, %vm195_vm5 }
  0xe1   :  { %2570 = vmatmul.mubr.msk.bf16.gmra.mrb[12].mxu0 %vm2169_vm7, %v2901_v51 }
  0xe2   :  { %v135_v32 = vpop.permute.xlu1 %134  ;;  %v138_v33 = vpop.permute.xlu0 %137 }
  0xe3   :  { %vm197_vm8 = vcmp.eq.s32.totalorder %v3149_v47, %v135_v32  ;;  %vm198_vm9 = vcmp.eq.s32.totalorder %v3149_v47, %v138_v33 }
  0xe4   :  { %vm2171_vm10 = vmpackc.low %vm198_vm9, %vm197_vm8 }
  0xe5   :  { %2573 = vmatprep.mubr.msk.bf16.mxu0 %vm2171_vm10, %v2901_v51 }
  0xe6   :  { %v141_v35 = vpop.permute.xlu1 %140  ;;  %v144_v36 = vpop.permute.xlu0 %143 }
  0xe7   :  { %vm199_vm11 = vcmp.eq.s32.totalorder %v3149_v47, %v141_v35  ;;  %vm200_vm12 = vcmp.eq.s32.totalorder %v3149_v47, %v144_v36 }
  0xe8   :  { %vm2173_vm13 = vmpackc.low %vm200_vm12, %vm199_vm11 }
  0xe9   :  { %2574 = vmatmul.mubr.msk.bf16.gmra.mrb[16].mxu0 %vm2173_vm13, %v2901_v51 }
  0xea   :  { %v147_v37 = vpop.permute.xlu1 %146  ;;  %v150_v38 = vpop.permute.xlu0 %149 }
  0xeb   :  { %vm201_vm14 = vcmp.eq.s32.totalorder %v3149_v47, %v147_v37  ;;  %vm202_vm15 = vcmp.eq.s32.totalorder %v3149_v47, %v150_v38 }
  0xec   :  { %vm2175_vm0 = vmpackc.low %vm202_vm15, %vm201_vm14 }
  0xed   :  { %2577 = vmatprep.mubr.msk.bf16.mxu0 %vm2175_vm0, %v2901_v51  ;;  %vm913_vm0 = vcmask 130048  }
  0xee   :  { %v153_v39 = vpop.permute.xlu1 %152  ;;  %v156_v40 = vpop.permute.xlu0 %155 }
  0xef   :  { %vm203_vm1 = vcmp.eq.s32.totalorder %v3149_v47, %v153_v39  ;;  %vm204_vm2 = vcmp.eq.s32.totalorder %v3149_v47, %v156_v40 }
  0xf0   :  { %vm2177_vm3 = vmpackc.low %vm204_vm2, %vm203_vm1  ;;  %vm1480_vm1 = vcmask 261120  }
  0xf1   :  { %2578 = vmatmul.mubr.msk.bf16.gmra.mrb[20].mxu0 %vm2177_vm3, %v2901_v51  ;;  %vm3622_vm2 = vmpackc.low %vm913_vm0, %vm913_vm0 }
  0xf2   :  { %v159_v41 = vpop.permute.xlu1 %158  ;;  %v162_v42 = vpop.permute.xlu0 %161 }
  0xf3   :  { %vm205_vm4 = vcmp.eq.s32.totalorder %v3149_v47, %v159_v41  ;;  %vm206_vm5 = vcmp.eq.s32.totalorder %v3149_v47, %v162_v42 }
  0xf4   :  { %vm2179_vm6 = vmpackc.low %vm206_vm5, %vm205_vm4 }
  0xf5   :  { %2581 = vmatprep.mubr.msk.bf16.mxu0 %vm2179_vm6, %v2901_v51 }
  0xf6   :  { %v165_v44 = vpop.permute.xlu1 %164  ;;  %v168_v45 = vpop.permute.xlu0 %167 }
  0xf7   :  { %vm207_vm7 = vcmp.eq.s32.totalorder %v3149_v47, %v165_v44  ;;  %vm208_vm8 = vcmp.eq.s32.totalorder %v3149_v47, %v168_v45 }
  0xf8   :  { %vm2181_vm9 = vmpackc.low %vm208_vm8, %vm207_vm7 }
  0xf9   :  { %2582 = vmatmul.mubr.msk.bf16.gmra.mrb[24].mxu0 %vm2181_vm9, %v2901_v51 }
  0xfa   :  { %v171_v46 = vpop.permute.xlu1 %170  ;;  %v174_v48 = vpop.permute.xlu0 %173 }
  0xfb   :  { %vm209_vm10 = vcmp.eq.s32.totalorder %v3149_v47, %v171_v46  ;;  %vm210_vm11 = vcmp.eq.s32.totalorder %v3149_v47, %v174_v48 }
  0xfc   :  { %vm2183_vm12 = vmpackc.low %vm210_vm11, %vm209_vm10 }
  0xfd   :  { %2585 = vmatprep.mubr.msk.bf16.mxu0 %vm2183_vm12, %v2901_v51 }
  0xfe   :  { %v177_v49 = vpop.permute.xlu1 %176  ;;  %v180_v50 = vpop.permute.xlu0 %179 }
  0xff   :  { %vm211_vm13 = vcmp.eq.s32.totalorder %v3149_v47, %v177_v49  ;;  %vm212_vm14 = vcmp.eq.s32.totalorder %v3149_v47, %v180_v50 }
 0x100   :  { %vm2185_vm15 = vmpackc.low %vm212_vm14, %vm211_vm13 }
 0x101   :  { %2586 = vmatmul.mubr.msk.bf16.gmra.mrb[28].mxu0 %vm2185_vm15, %v2901_v51 }
 0x15d   :  { %v3257_v52 = vpop.f32.mrb[0].mxu1 }
 0x15e   :  { %v3262_v54 = vpop.f32.mrb[1].mxu1 }
 0x15f   :  { %v3267_v56 = vpop.f32.mrb[2].mxu1 }
 0x160   :  { %v890_v47 = vpack.c.bf16 %v3267_v56, %v3257_v52  ;;  %v3271_v57 = vpop.f32.mrb[3].mxu1 }
 0x161   :  { %v889_v51 = vpack.c.bf16 %v3271_v57, %v3262_v54 }
 0x163   :  { %2639 = vmatprep.mubr.msk.bf16.mxu0 %vm913_vm0, %v889_v51 }
 0x164   :  { %2640 = vmatmul.mubr.msk.bf16.vlgmr.msra.gmra.mrb[32].mxu0 %vm913_vm0, %v890_v47 }
 0x165   :  { %2672 = vmatpush3.bf16.msra.mxu0 %v2888_v34  ;;  %v3277_v58 = vpop.f32.mrb[4].mxu1 }
 0x166   :  { %v3279_v59 = vpop.f32.mrb[5].mxu1 }
 0x167   :  { %v3281_v60 = vpop.f32.mrb[6].mxu1 }
 0x168   :  { %v892_v61 = vpack.c.bf16 %v3281_v60, %v3277_v58  ;;  %v3285_v62 = vpop.f32.mrb[7].mxu1 }
 0x169   :  { %v891_v63 = vpack.c.bf16 %v3285_v62, %v3279_v59 }
 0x16b   :  { %2643 = vmatprep.mubr.msk.bf16.mxu0 %vm913_vm0, %v891_v63 }
 0x16c   :  { %2644 = vmatmul.mubr.msk.bf16.gmra.mrb[36].mxu0 %vm913_vm0, %v892_v61 }
 0x16d   :  { %v3291_v0 = vpop.f32.mrb[8].mxu1 }
 0x16e   :  { %v3293_v1 = vpop.f32.mrb[9].mxu1 }
 0x16f   :  { %v3295_v2 = vpop.f32.mrb[10].mxu1 }
 0x170   :  { %v894_v3 = vpack.c.bf16 %v3295_v2, %v3291_v0  ;;  %v3299_v4 = vpop.f32.mrb[11].mxu1 }
 0x171   :  { %v893_v5 = vpack.c.bf16 %v3299_v4, %v3293_v1 }
 0x173   :  { %2647 = vmatprep.mubr.msk.bf16.mxu0 %vm913_vm0, %v893_v5 }
 0x174   :  { %2648 = vmatmul.mubr.msk.bf16.gmra.mrb[40].mxu0 %vm913_vm0, %v894_v3 }
 0x175   :  { %v3305_v6 = vpop.f32.mrb[12].mxu1 }
 0x176   :  { %v3307_v7 = vpop.f32.mrb[13].mxu1 }
 0x177   :  { %v3309_v8 = vpop.f32.mrb[14].mxu1 }
 0x178   :  { %v896_v9 = vpack.c.bf16 %v3309_v8, %v3305_v6  ;;  %v3313_v10 = vpop.f32.mrb[15].mxu1 }
 0x179   :  { %v895_v11 = vpack.c.bf16 %v3313_v10, %v3307_v7 }
 0x17b   :  { %2651 = vmatprep.mubr.msk.bf16.mxu0 %vm913_vm0, %v895_v11 }
 0x17c   :  { %2652 = vmatmul.mubr.msk.bf16.gmra.mrb[44].mxu0 %vm913_vm0, %v896_v9 }
 0x17d   :  { %v3319_v12 = vpop.f32.mrb[16].mxu1 }
 0x17e   :  { %v3321_v13 = vpop.f32.mrb[17].mxu1 }
 0x17f   :  { %v3323_v14 = vpop.f32.mrb[18].mxu1 }
 0x180   :  { %v898_v15 = vpack.c.bf16 %v3323_v14, %v3319_v12  ;;  %v3327_v16 = vpop.f32.mrb[19].mxu1 }
 0x181   :  { %v897_v17 = vpack.c.bf16 %v3327_v16, %v3321_v13 }
 0x183   :  { %2655 = vmatprep.mubr.msk.bf16.mxu0 %vm913_vm0, %v897_v17 }
 0x184   :  { %2656 = vmatmul.mubr.msk.bf16.gmra.mrb[48].mxu0 %vm913_vm0, %v898_v15 }
 0x185   :  { %v3333_v18 = vpop.f32.mrb[20].mxu1 }
 0x186   :  { %v3335_v19 = vpop.f32.mrb[21].mxu1 }
 0x187   :  { %v3337_v20 = vpop.f32.mrb[22].mxu1 }
 0x188   :  { %v900_v21 = vpack.c.bf16 %v3337_v20, %v3333_v18  ;;  %v3341_v22 = vpop.f32.mrb[23].mxu1 }
 0x189   :  { %v899_v23 = vpack.c.bf16 %v3341_v22, %v3335_v19 }
 0x18b   :  { %2659 = vmatprep.mubr.msk.bf16.mxu0 %vm913_vm0, %v899_v23 }
 0x18c   :  { %2660 = vmatmul.mubr.msk.bf16.gmra.mrb[52].mxu0 %vm913_vm0, %v900_v21 }
 0x18d   :  { %v3347_v24 = vpop.f32.mrb[24].mxu1 }
 0x18e   :  { %v3349_v25 = vpop.f32.mrb[25].mxu1 }
 0x18f   :  { %v3351_v26 = vpop.f32.mrb[26].mxu1 }
 0x190   :  { %v902_v27 = vpack.c.bf16 %v3351_v26, %v3347_v24  ;;  %v3355_v28 = vpop.f32.mrb[27].mxu1 }
 0x191   :  { %v901_v29 = vpack.c.bf16 %v3355_v28, %v3349_v25 }
 0x193   :  { %2663 = vmatprep.mubr.msk.bf16.mxu0 %vm913_vm0, %v901_v29 }
 0x194   :  { %2664 = vmatmul.mubr.msk.bf16.gmra.mrb[56].mxu0 %vm913_vm0, %v902_v27 }
 0x195   :  { %v3361_v30 = vpop.f32.mrb[28].mxu1 }
 0x196   :  { %v3363_v31 = vpop.f32.mrb[29].mxu1 }
 0x197   :  { %v3365_v32 = vpop.f32.mrb[30].mxu1 }
 0x198   :  { %v904_v33 = vpack.c.bf16 %v3365_v32, %v3361_v30  ;;  %v3369_v34 = vpop.f32.mrb[31].mxu1 }
 0x199   :  { %v903_v35 = vpack.c.bf16 %v3369_v34, %v3363_v31 }
 0x19b   :  { %2667 = vmatprep.mubr.msk.bf16.mxu0 %vm913_vm0, %v903_v35 }
 0x19c   :  { %2668 = vmatmul.mubr.msk.bf16.gmra.mrb[60].mxu0 %vm913_vm0, %v904_v33  ;;  %v2559_v36 = vpop.f32.mrb[0].mxu0 }
 0x19d   :  { %v3376_v37 = vmul.f32 %v3257_v52, %v2559_v36  ;;  %v375_v38 = vpop.f32.mrb[1].mxu0 }
 0x19e   :  { %v3379_v39 = vmul.f32 %v3262_v54, %v375_v38  ;;  %v2560_v40 = vpop.f32.mrb[2].mxu0 }
 0x19f   :  { %v503_v41 = vpack.c.bf16 %v2560_v40, %v2559_v36  ;;  %v3382_v42 = vmul.f32 %v3267_v56, %v2560_v40  ;;  %v378_v44 = vpop.f32.mrb[3].mxu0 }
 0x1a0   :  { %v502_v45 = vpack.c.bf16 %v378_v44, %v375_v38  ;;  %v3385_v46 = vmul.f32 %v3271_v57, %v378_v44 }
 0x1a2   :  { %v2792_v49 = vpack.c.bf16 %v3385_v46, %v3379_v39  ;;  %2673 = vmatprep.mubr.msk.bf16.mxu0 %vm913_vm0, %v502_v45 }
 0x1a4   :  { %2674 = vmatmul.mubr.msk.bf16.vlgmr.msra.gmra.mrb[32].mxu0 %vm913_vm0, %v503_v41  ;;  %v2563_v50 = vpop.f32.mrb[4].mxu0 }
 0x1a5   :  { %v3394_v52 = vmul.f32 %v3277_v58, %v2563_v50  ;;  %v391_v53 = vpop.f32.mrb[5].mxu0 }
 0x1a6   :  { %v3397_v54 = vmul.f32 %v3279_v59, %v391_v53  ;;  %v2564_v55 = vpop.f32.mrb[6].mxu0 }
 0x1a7   :  { %v505_v56 = vpack.c.bf16 %v2564_v55, %v2563_v50  ;;  %v3400_v47 = vmul.f32 %v3281_v60, %v2564_v55  ;;  %v394_v57 = vpop.f32.mrb[7].mxu0 }
 0x1a8   :  { %v504_v51 = vpack.c.bf16 %v394_v57, %v391_v53  ;;  %v3403_v61 = vmul.f32 %v3285_v62, %v394_v57 }
 0x1aa   :  { %2677 = vmatprep.mubr.msk.bf16.mxu0 %vm913_vm0, %v504_v51  ;;  %v3786_v46 = vpack.c.bf16 %v3403_v61, %v3397_v54 }
 0x1ac   :  { %2678 = vmatmul.mubr.msk.bf16.gmra.mrb[36].mxu0 %vm913_vm0, %v505_v56  ;;  %v2567_v59 = vpop.f32.mrb[8].mxu0 }
 0x1ad   :  { %v3412_v3 = vmul.f32 %v3291_v0, %v2567_v59  ;;  %v407_v60 = vpop.f32.mrb[9].mxu0 }
 0x1ae   :  { %v3415_v5 = vmul.f32 %v3293_v1, %v407_v60  ;;  %v2568_v62 = vpop.f32.mrb[10].mxu0 }
 0x1af   :  { %v507_v9 = vpack.c.bf16 %v2568_v62, %v2567_v59  ;;  %v3418_v11 = vmul.f32 %v3295_v2, %v2568_v62  ;;  %v410_v15 = vpop.f32.mrb[11].mxu0 }
 0x1b0   :  { %v506_v17 = vpack.c.bf16 %v410_v15, %v407_v60  ;;  %v3421_v21 = vmul.f32 %v3299_v4, %v410_v15 }
 0x1b2   :  { %2681 = vmatprep.mubr.msk.bf16.mxu0 %vm913_vm0, %v506_v17  ;;  %v3790_v54 = vpack.c.bf16 %v3421_v21, %v3415_v5 }
 0x1b4   :  { %2682 = vmatmul.mubr.msk.bf16.gmra.mrb[40].mxu0 %vm913_vm0, %v507_v9  ;;  %v2571_v1 = vpop.f32.mrb[12].mxu0 }
 0x1b5   :  { %v3430_v27 = vmul.f32 %v3305_v6, %v2571_v1  ;;  %v423_v2 = vpop.f32.mrb[13].mxu0 }
 0x1b6   :  { %v3433_v29 = vmul.f32 %v3307_v7, %v423_v2  ;;  %v2572_v4 = vpop.f32.mrb[14].mxu0 }
 0x1b7   :  { %v509_v33 = vpack.c.bf16 %v2572_v4, %v2571_v1  ;;  %v3436_v35 = vmul.f32 %v3309_v8, %v2572_v4  ;;  %v426_v36 = vpop.f32.mrb[15].mxu0 }
 0x1b8   :  { %v508_v38 = vpack.c.bf16 %v426_v36, %v423_v2  ;;  %v3439_v40 = vmul.f32 %v3313_v10, %v426_v36 }
 0x1ba   :  { %2685 = vmatprep.mubr.msk.bf16.mxu0 %vm913_vm0, %v508_v38  ;;  %v3794_v5 = vpack.c.bf16 %v3439_v40, %v3433_v29  ;;  %v2068_v40 = vpop.permute.xlu1 %2067 }
 0x1bc   :  { %2686 = vmatmul.mubr.msk.bf16.gmra.mrb[44].mxu0 %vm913_vm0, %v509_v33  ;;  %v2575_v7 = vpop.f32.mrb[16].mxu0 }
 0x1bd   :  { %v3448_v44 = vmul.f32 %v3319_v12, %v2575_v7  ;;  %v439_v8 = vpop.f32.mrb[17].mxu0 }
 0x1be   :  { %v3451_v45 = vmul.f32 %v3321_v13, %v439_v8  ;;  %v2576_v10 = vpop.f32.mrb[18].mxu0 }
 0x1bf   :  { %v511_v50 = vpack.c.bf16 %v2576_v10, %v2575_v7  ;;  %v3454_v53 = vmul.f32 %v3323_v14, %v2576_v10  ;;  %v442_v55 = vpop.f32.mrb[19].mxu0 }
 0x1c0   :  { %v510_v56 = vpack.c.bf16 %v442_v55, %v439_v8  ;;  %v3457_v57 = vmul.f32 %v3327_v16, %v442_v55 }
 0x1c1   :  { %v2795_v51 = vpack.c.bf16 %v3454_v53, %v3448_v44 }
 0x1c2   :  { %v2789_v12 = vpack.c.bf16 %v3457_v57, %v3451_v45  ;;  %2689 = vmatprep.mubr.msk.bf16.mxu0 %vm913_vm0, %v510_v56  ;;  %v3784_v45 = vpack.c.bf16 %v3382_v42, %v3376_v37  ;;  %v3788_v37 = vpack.c.bf16 %v3400_v47, %v3394_v52  ;;  %v3792_v52 = vpack.c.bf16 %v3418_v11, %v3412_v3 }
 0x1c3   :  { %v3796_v3 = vpack.c.bf16 %v3436_v35, %v3430_v27  ;;  %v3797_v11 = vlaneseq }
 0x1c4   :  { %2690 = vmatmul.mubr.msk.bf16.gmra.mrb[48].mxu0 %vm913_vm0, %v511_v50  ;;  %v2579_v13 = vpop.f32.mrb[20].mxu0 }
 0x1c5   :  { %v3466_v59 = vmul.f32 %v3333_v18, %v2579_v13  ;;  %v455_v14 = vpop.f32.mrb[21].mxu0  ;;  %v2071_v44 = vshrl.u32 %v3797_v11, 7  ;;  %vm2108_vm3 = vcmp.lt.s32.totalorder %v3797_v11, 256 }
 0x1c6   :  { %v3469_v60 = vmul.f32 %v3335_v19, %v455_v14  ;;  %v2580_v16 = vpop.f32.mrb[22].mxu0 }
 0x1c7   :  { %v513_v62 = vpack.c.bf16 %v2580_v16, %v2579_v13  ;;  %v3472_v9 = vmul.f32 %v3337_v20, %v2580_v16  ;;  %v458_v15 = vpop.f32.mrb[23].mxu0  ;;  %v2072_v29 = vsub.s32 0, %v2071_v44 }
 0x1c8   :  { %v512_v17 = vpack.c.bf16 %v458_v15, %v455_v14  ;;  %v3475_v1 = vmul.f32 %v3341_v22, %v458_v15 }
 0x1c9   :  { %v2073_v53 = vrot.slane %v2068_v40, %v2072_v29 }
 0x1ca   :  { %2693 = vmatprep.mubr.msk.bf16.mxu0 %vm913_vm0, %v512_v17  ;;  %v3785_v39 = vpack.c.bf16 %v3475_v1, %v3469_v60 }
 0x1cc   :  { %2694 = vmatmul.mubr.msk.bf16.gmra.mrb[52].mxu0 %vm913_vm0, %v513_v62  ;;  %v2583_v19 = vpop.f32.mrb[24].mxu0 }
 0x1cd   :  { %v3484_v4 = vmul.f32 %v3347_v24, %v2583_v19  ;;  %v471_v20 = vpop.f32.mrb[25].mxu0 }
 0x1ce   :  { %v3487_v33 = vmul.f32 %v3349_v25, %v471_v20  ;;  %v2584_v22 = vpop.f32.mrb[26].mxu0 }
 0x1cf   :  { %v515_v36 = vpack.c.bf16 %v2584_v22, %v2583_v19  ;;  %v3490_v38 = vmul.f32 %v3351_v26, %v2584_v22  ;;  %v474_v7 = vpop.f32.mrb[27].mxu0 }
 0x1d0   :  { %v514_v8 = vpack.c.bf16 %v474_v7, %v471_v20  ;;  %v3493_v10 = vmul.f32 %v3355_v28, %v474_v7 }
 0x1d1   :  { %v3791_v61 = vpack.c.bf16 %v3490_v38, %v3484_v4 }
 0x1d2   :  { %2697 = vmatprep.mubr.msk.bf16.mxu0 %vm913_vm0, %v514_v8  ;;  %v3789_v42 = vpack.c.bf16 %v3493_v10, %v3487_v33  ;;  %v2902_v33 = vmov 1966171168  }
 0x1d3   :  { %v2092_v38 = vunpack.c.l.s4 %v2902_v33 }
 0x1d4   :  { %2698 = vmatmul.mubr.msk.bf16.gmra.mrb[56].mxu0 %vm913_vm0, %v515_v36  ;;  %v2587_v25 = vpop.f32.mrb[28].mxu0 }
 0x1d5   :  { %v3502_v55 = vmul.f32 %v3361_v30, %v2587_v25  ;;  %v487_v26 = vpop.f32.mrb[29].mxu0  ;;  %v2093_v10 = vunpack.c.0.s8 %v2092_v38 }
 0x1d6   :  { %v3505_v56 = vmul.f32 %v3363_v31, %v487_v26  ;;  %v2588_v28 = vpop.f32.mrb[30].mxu0  ;;  %v3522_v31 = vld [vmem:[%s3775_s3] ss:$0 sm:$0xff] }
 0x1d7   :  { %v517_v13 = vpack.c.bf16 %v2588_v28, %v2587_v25  ;;  %v3508_v14 = vmul.f32 %v3365_v32, %v2588_v28  ;;  %v490_v16 = vpop.f32.mrb[31].mxu0 }
 0x1d8   :  { %v516_v62 = vpack.c.bf16 %v490_v16, %v487_v26  ;;  %v3511_v15 = vmul.f32 %v3369_v34, %v490_v16 }
 0x1d9   :  { %v3795_v21 = vpack.c.bf16 %v3508_v14, %v3502_v55 }
 0x1da   :  { %2701 = vmatprep.mubr.msk.bf16.mxu0 %vm913_vm0, %v516_v62  ;;  %v3793_v47 = vpack.c.bf16 %v3511_v15, %v3505_v56  ;;  %v2096_v56 = vsub.s32 %v2093_v10, %v2071_v44 }
 0x1dc   :  { %2702 = vmatmul.mubr.msk.bf16.gmra.mrb[60].mxu0 %vm913_vm0, %v517_v13 }
 0x277   :  { %v2675_v32 = vpop.f32.mrb[32].mxu0 }
 0x278   :  { %v1347_v19 = vadd.f32 %v2675_v32, %v3522_v31  ;;  %v1211_v34 = vpop.f32.mrb[33].mxu0 }
 0x279   :  { %v1345_v20 = vadd.f32 %v3522_v31, %v1211_v34  ;;  %v2676_v22 = vpop.f32.mrb[34].mxu0 }
 0x27a   :  { %v1348_v36 = vadd.f32 %v2676_v22, %v3522_v31  ;;  %v1214_v7 = vpop.f32.mrb[35].mxu0  ;;  %v1411_v25 = vmax.f32 %v1347_v19, 0.0 }
 0x27b   :  { %v1346_v8 = vadd.f32 %v3522_v31, %v1214_v7  ;;  %v1409_v28 = vmax.f32 %v1345_v20, 0.0 }
 0x27c   :  { %v1412_v26 = vmax.f32 %v1348_v36, 0.0 }
 0x27d   :  { %v1410_v13 = vmax.f32 %v1346_v8, 0.0 }
 0x27e   :  { %v1442_v16 = vpack.c.bf16 %v1412_v26, %v1411_v25 }
 0x27f   :  { %v1441_v62 = vpack.c.bf16 %v1410_v13, %v1409_v28  ;;  %v2679_v43 = vpop.f32.mrb[36].mxu0 }
 0x280   :  { %v1351_v41 = vadd.f32 %v2679_v43, %v3522_v31  ;;  %v1227_v32 = vpop.f32.mrb[37].mxu0 }
 0x281   :  { %v1349_v17 = vadd.f32 %v3522_v31, %v1227_v32  ;;  %v2680_v34 = vpop.f32.mrb[38].mxu0  ;;  %2709 = vmatprep.mubr.msk.bf16.mxu1 %vm1480_vm1, %v1441_v62 }
 0x282   :  { %v1352_v22 = vadd.f32 %v2680_v34, %v3522_v31  ;;  %v1230_v6 = vpop.f32.mrb[39].mxu0  ;;  %2710 = vmatmul.mubr.msk.bf16.vlgmr.msra.gmra.mrb[32].mxu1 %vm1480_vm1, %v1442_v16  ;;  %v1415_v20 = vmax.f32 %v1351_v41, 0.0 }
 0x283   :  { %v1350_v19 = vadd.f32 %v3522_v31, %v1230_v6  ;;  %v1413_v7 = vmax.f32 %v1349_v17, 0.0 }
 0x284   :  { %v1416_v36 = vmax.f32 %v1352_v22, 0.0 }
 0x285   :  { %v1414_v8 = vmax.f32 %v1350_v19, 0.0 }
 0x286   :  { %v1444_v25 = vpack.c.bf16 %v1416_v36, %v1415_v20 }
 0x287   :  { %v1443_v26 = vpack.c.bf16 %v1414_v8, %v1413_v7  ;;  %v2683_v43 = vpop.f32.mrb[40].mxu0 }
 0x288   :  { %v1355_v28 = vadd.f32 %v2683_v43, %v3522_v31  ;;  %v1243_v13 = vpop.f32.mrb[41].mxu0 }
 0x289   :  { %v1353_v32 = vadd.f32 %v3522_v31, %v1243_v13  ;;  %v2684_v62 = vpop.f32.mrb[42].mxu0  ;;  %2713 = vmatprep.mubr.msk.bf16.mxu1 %vm1480_vm1, %v1443_v26 }
 0x28a   :  { %v1356_v34 = vadd.f32 %v2684_v62, %v3522_v31  ;;  %v1246_v16 = vpop.f32.mrb[43].mxu0  ;;  %2714 = vmatmul.mubr.msk.bf16.gmra.mrb[36].mxu1 %vm1480_vm1, %v1444_v25  ;;  %v1419_v6 = vmax.f32 %v1355_v28, 0.0 }
 0x28b   :  { %v1354_v41 = vadd.f32 %v3522_v31, %v1246_v16  ;;  %v1417_v22 = vmax.f32 %v1353_v32, 0.0 }
 0x28c   :  { %v1420_v17 = vmax.f32 %v1356_v34, 0.0 }
 0x28d   :  { %v1418_v19 = vmax.f32 %v1354_v41, 0.0 }
 0x28e   :  { %v1446_v20 = vpack.c.bf16 %v1420_v17, %v1419_v6 }
 0x28f   :  { %v1445_v36 = vpack.c.bf16 %v1418_v19, %v1417_v22  ;;  %v2687_v7 = vpop.f32.mrb[44].mxu0 }
 0x290   :  { %v1359_v8 = vadd.f32 %v2687_v7, %v3522_v31  ;;  %v1259_v43 = vpop.f32.mrb[45].mxu0 }
 0x291   :  { %v1357_v13 = vadd.f32 %v3522_v31, %v1259_v43  ;;  %v2688_v26 = vpop.f32.mrb[46].mxu0  ;;  %2717 = vmatprep.mubr.msk.bf16.mxu1 %vm1480_vm1, %v1445_v36 }
 0x292   :  { %v1360_v62 = vadd.f32 %v2688_v26, %v3522_v31  ;;  %v1262_v25 = vpop.f32.mrb[47].mxu0  ;;  %2718 = vmatmul.mubr.msk.bf16.gmra.mrb[40].mxu1 %vm1480_vm1, %v1446_v20  ;;  %v1423_v32 = vmax.f32 %v1359_v8, 0.0 }
 0x293   :  { %v1358_v28 = vadd.f32 %v3522_v31, %v1262_v25  ;;  %v1421_v16 = vmax.f32 %v1357_v13, 0.0 }
 0x294   :  { %v1424_v34 = vmax.f32 %v1360_v62, 0.0 }
 0x295   :  { %v1422_v41 = vmax.f32 %v1358_v28, 0.0 }
 0x296   :  { %v1448_v6 = vpack.c.bf16 %v1424_v34, %v1423_v32 }
 0x297   :  { %v1447_v17 = vpack.c.bf16 %v1422_v41, %v1421_v16  ;;  %v2691_v22 = vpop.f32.mrb[48].mxu0 }
 0x298   :  { %v1363_v19 = vadd.f32 %v2691_v22, %v3522_v31  ;;  %v1275_v7 = vpop.f32.mrb[49].mxu0 }
 0x299   :  { %v1361_v43 = vadd.f32 %v3522_v31, %v1275_v7  ;;  %v2692_v36 = vpop.f32.mrb[50].mxu0  ;;  %2721 = vmatprep.mubr.msk.bf16.mxu1 %vm1480_vm1, %v1447_v17 }
 0x29a   :  { %v1364_v26 = vadd.f32 %v2692_v36, %v3522_v31  ;;  %v1278_v20 = vpop.f32.mrb[51].mxu0  ;;  %2722 = vmatmul.mubr.msk.bf16.gmra.mrb[44].mxu1 %vm1480_vm1, %v1448_v6  ;;  %v1427_v13 = vmax.f32 %v1363_v19, 0.0 }
 0x29b   :  { %v1362_v8 = vadd.f32 %v3522_v31, %v1278_v20  ;;  %v1425_v25 = vmax.f32 %v1361_v43, 0.0 }
 0x29c   :  { %v1428_v62 = vmax.f32 %v1364_v26, 0.0 }
 0x29d   :  { %v1426_v28 = vmax.f32 %v1362_v8, 0.0 }
 0x29e   :  { %v1450_v32 = vpack.c.bf16 %v1428_v62, %v1427_v13 }
 0x29f   :  { %v1449_v34 = vpack.c.bf16 %v1426_v28, %v1425_v25  ;;  %v2695_v16 = vpop.f32.mrb[52].mxu0 }
 0x2a0   :  { %v1367_v41 = vadd.f32 %v2695_v16, %v3522_v31  ;;  %v1291_v22 = vpop.f32.mrb[53].mxu0 }
 0x2a1   :  { %v1365_v7 = vadd.f32 %v3522_v31, %v1291_v22  ;;  %v2696_v17 = vpop.f32.mrb[54].mxu0  ;;  %2725 = vmatprep.mubr.msk.bf16.mxu1 %vm1480_vm1, %v1449_v34 }
 0x2a2   :  { %v1368_v36 = vadd.f32 %v2696_v17, %v3522_v31  ;;  %v1294_v6 = vpop.f32.mrb[55].mxu0  ;;  %2726 = vmatmul.mubr.msk.bf16.gmra.mrb[48].mxu1 %vm1480_vm1, %v1450_v32  ;;  %v1431_v43 = vmax.f32 %v1367_v41, 0.0 }
 0x2a3   :  { %v1366_v19 = vadd.f32 %v3522_v31, %v1294_v6  ;;  %v1429_v20 = vmax.f32 %v1365_v7, 0.0 }
 0x2a4   :  { %v1432_v26 = vmax.f32 %v1368_v36, 0.0 }
 0x2a5   :  { %v1430_v8 = vmax.f32 %v1366_v19, 0.0 }
 0x2a6   :  { %v1452_v13 = vpack.c.bf16 %v1432_v26, %v1431_v43 }
 0x2a7   :  { %v1451_v62 = vpack.c.bf16 %v1430_v8, %v1429_v20  ;;  %v2699_v25 = vpop.f32.mrb[56].mxu0 }
 0x2a8   :  { %v1371_v28 = vadd.f32 %v2699_v25, %v3522_v31  ;;  %v1307_v16 = vpop.f32.mrb[57].mxu0 }
 0x2a9   :  { %v1369_v22 = vadd.f32 %v3522_v31, %v1307_v16  ;;  %v2700_v34 = vpop.f32.mrb[58].mxu0  ;;  %2729 = vmatprep.mubr.msk.bf16.mxu1 %vm1480_vm1, %v1451_v62 }
 0x2aa   :  { %v1372_v17 = vadd.f32 %v2700_v34, %v3522_v31  ;;  %v1310_v32 = vpop.f32.mrb[59].mxu0  ;;  %2730 = vmatmul.mubr.msk.bf16.gmra.mrb[52].mxu1 %vm1480_vm1, %v1452_v13  ;;  %v1435_v7 = vmax.f32 %v1371_v28, 0.0 }
 0x2ab   :  { %v1370_v41 = vadd.f32 %v3522_v31, %v1310_v32  ;;  %v1433_v6 = vmax.f32 %v1369_v22, 0.0 }
 0x2ac   :  { %v1436_v36 = vmax.f32 %v1372_v17, 0.0 }
 0x2ad   :  { %v1434_v19 = vmax.f32 %v1370_v41, 0.0 }
 0x2ae   :  { %v1454_v43 = vpack.c.bf16 %v1436_v36, %v1435_v7 }
 0x2af   :  { %v1453_v26 = vpack.c.bf16 %v1434_v19, %v1433_v6  ;;  %v2703_v20 = vpop.f32.mrb[60].mxu0  ;;  %v3575_v6 = vld [vmem:[%s3776_s7] sm:$0xff] }
 0x2b0   :  { %v1375_v8 = vadd.f32 %v2703_v20, %v3522_v31  ;;  %v1323_v25 = vpop.f32.mrb[61].mxu0 }
 0x2b1   :  { %v1373_v16 = vadd.f32 %v3522_v31, %v1323_v25  ;;  %v2704_v62 = vpop.f32.mrb[62].mxu0  ;;  %2733 = vmatprep.mubr.msk.bf16.mxu1 %vm1480_vm1, %v1453_v26 }
 0x2b2   :  { %v1376_v34 = vadd.f32 %v2704_v62, %v3522_v31  ;;  %v1326_v13 = vpop.f32.mrb[63].mxu0  ;;  %2734 = vmatmul.mubr.msk.bf16.gmra.mrb[56].mxu1 %vm1480_vm1, %v1454_v43  ;;  %v1439_v22 = vmax.f32 %v1375_v8, 0.0 }
 0x2b3   :  { %v1374_v28 = vadd.f32 %v3522_v31, %v1326_v13  ;;  %v1437_v32 = vmax.f32 %v1373_v16, 0.0  ;;  %v3582_v31 = vld [vmem:[%s3777_s5] ss:$0 sm:$0xff] }
 0x2b4   :  { %v1440_v17 = vmax.f32 %v1376_v34, 0.0 }
 0x2b5   :  { %v1438_v41 = vmax.f32 %v1374_v28, 0.0 }
 0x2b6   :  { %v1456_v7 = vpack.c.bf16 %v1440_v17, %v1439_v22 }
 0x2b7   :  { %v1455_v36 = vpack.c.bf16 %v1438_v41, %v1437_v32 }
 0x2b9   :  { %2737 = vmatprep.mubr.msk.bf16.mxu1 %vm1480_vm1, %v1455_v36 }
 0x2ba   :  { %2738 = vmatmul.mubr.msk.bf16.gmra.mrb[60].mxu1 %vm1480_vm1, %v1456_v7 }
 0x2bb   :  { %2505 = vmatprep.mubr.msk.f32.mxu1 %vm913_vm0, %v3575_v6 }
 0x355   :  { %v2711_v19 = vpop.f32.mrb[32].mxu1 }
 0x356   :  { %v1572_v43 = vadd.f32 %v2711_v19, %v3582_v31  ;;  %v1563_v26 = vpop.f32.mrb[33].mxu1 }
 0x357   :  { %v1564_v20 = vadd.f32 %v3582_v31, %v1563_v26  ;;  %v2712_v8 = vpop.f32.mrb[34].mxu1 }
 0x358   :  { %v1575_v25 = vadd.f32 %v2712_v8, %v3582_v31  ;;  %v1566_v16 = vpop.f32.mrb[35].mxu1  ;;  %v1692_v34 = vmax.f32 %v1572_v43, 0.0 }
 0x359   :  { %v1567_v62 = vadd.f32 %v3582_v31, %v1566_v16  ;;  %v1690_v28 = vmax.f32 %v1564_v20, 0.0 }
 0x35a   :  { %v1693_v13 = vmax.f32 %v1575_v25, 0.0 }
 0x35b   :  { %v1691_v22 = vmax.f32 %v1567_v62, 0.0 }
 0x35c   :  { %v3588_v17 = vpack.c.bf16 %v1693_v13, %v1692_v34 }
 0x35d   :  { %v3590_v32 = vpack.c.bf16 %v1691_v22, %v1690_v28  ;;  %v2715_v41 = vpop.f32.mrb[36].mxu1 }
 0x35e   :  { %v1588_v7 = vadd.f32 %v2715_v41, %v3582_v31  ;;  %v1579_v36 = vpop.f32.mrb[37].mxu1 }
 0x35f   :  { %v1580_v19 = vadd.f32 %v3582_v31, %v1579_v36  ;;  %v2716_v26 = vpop.f32.mrb[38].mxu1 }
 0x360   :  { %v1591_v8 = vadd.f32 %v2716_v26, %v3582_v31  ;;  %v1582_v30 = vpop.f32.mrb[39].mxu1  ;;  %v1696_v43 = vmax.f32 %v1588_v7, 0.0 }
 0x361   :  { %v1583_v16 = vadd.f32 %v3582_v31, %v1582_v30  ;;  %v1694_v20 = vmax.f32 %v1580_v19, 0.0 }
 0x362   :  { %v1697_v25 = vmax.f32 %v1591_v8, 0.0 }
 0x363   :  { %v1695_v62 = vmax.f32 %v1583_v16, 0.0 }
 0x364   :  { %v3596_v34 = vpack.c.bf16 %v1697_v25, %v1696_v43 }
 0x365   :  { %v3598_v13 = vpack.c.bf16 %v1695_v62, %v1694_v20  ;;  %v2719_v28 = vpop.f32.mrb[40].mxu1 }
 0x366   :  { %v1604_v22 = vadd.f32 %v2719_v28, %v3582_v31  ;;  %v1595_v41 = vpop.f32.mrb[41].mxu1 }
 0x367   :  { %v1596_v36 = vadd.f32 %v3582_v31, %v1595_v41  ;;  %v2720_v23 = vpop.f32.mrb[42].mxu1 }
 0x368   :  { %v1607_v26 = vadd.f32 %v2720_v23, %v3582_v31  ;;  %v1598_v50 = vpop.f32.mrb[43].mxu1  ;;  %v1700_v7 = vmax.f32 %v1604_v22, 0.0 }
 0x369   :  { %v1599_v30 = vadd.f32 %v3582_v31, %v1598_v50  ;;  %v1698_v19 = vmax.f32 %v1596_v36, 0.0 }
 0x36a   :  { %v1701_v8 = vmax.f32 %v1607_v26, 0.0 }
 0x36b   :  { %v1699_v16 = vmax.f32 %v1599_v30, 0.0 }
 0x36c   :  { %v3604_v43 = vpack.c.bf16 %v1701_v8, %v1700_v7 }
 0x36d   :  { %v3606_v25 = vpack.c.bf16 %v1699_v16, %v1698_v19  ;;  %v2723_v20 = vpop.f32.mrb[44].mxu1 }
 0x36e   :  { %v1620_v62 = vadd.f32 %v2723_v20, %v3582_v31  ;;  %v1611_v28 = vpop.f32.mrb[45].mxu1 }
 0x36f   :  { %v1612_v41 = vadd.f32 %v3582_v31, %v1611_v28  ;;  %v2724_v0 = vpop.f32.mrb[46].mxu1 }
 0x370   :  { %v1623_v23 = vadd.f32 %v2724_v0, %v3582_v31  ;;  %v1614_v24 = vpop.f32.mrb[47].mxu1  ;;  %v1704_v22 = vmax.f32 %v1620_v62, 0.0 }
 0x371   :  { %v1615_v50 = vadd.f32 %v3582_v31, %v1614_v24  ;;  %v1702_v36 = vmax.f32 %v1612_v41, 0.0 }
 0x372   :  { %v1705_v26 = vmax.f32 %v1623_v23, 0.0 }
 0x373   :  { %v1703_v30 = vmax.f32 %v1615_v50, 0.0 }
 0x374   :  { %v3612_v7 = vpack.c.bf16 %v1705_v26, %v1704_v22 }
 0x375   :  { %v3614_v8 = vpack.c.bf16 %v1703_v30, %v1702_v36  ;;  %v2727_v19 = vpop.f32.mrb[48].mxu1 }
 0x376   :  { %v1636_v16 = vadd.f32 %v2727_v19, %v3582_v31  ;;  %v1627_v20 = vpop.f32.mrb[49].mxu1 }
 0x377   :  { %v1628_v28 = vadd.f32 %v3582_v31, %v1627_v20  ;;  %v2728_v63 = vpop.f32.mrb[50].mxu1 }
 0x378   :  { %v1639_v0 = vadd.f32 %v2728_v63, %v3582_v31  ;;  %v1630_v2 = vpop.f32.mrb[51].mxu1  ;;  %v1708_v62 = vmax.f32 %v1636_v16, 0.0 }
 0x379   :  { %v1631_v24 = vadd.f32 %v3582_v31, %v1630_v2  ;;  %v1706_v41 = vmax.f32 %v1628_v28, 0.0 }
 0x37a   :  { %v1709_v23 = vmax.f32 %v1639_v0, 0.0 }
 0x37b   :  { %v1707_v50 = vmax.f32 %v1631_v24, 0.0 }
 0x37c   :  { %v2747_v22 = vpack.c.bf16 %v1709_v23, %v1708_v62 }
 0x37d   :  { %v2741_v36 = vpack.c.bf16 %v1707_v50, %v1706_v41  ;;  %v2731_v30 = vpop.f32.mrb[52].mxu1 }
 0x37e   :  { %v1652_v19 = vadd.f32 %v2731_v30, %v3582_v31  ;;  %v1643_v20 = vpop.f32.mrb[53].mxu1 }
 0x37f   :  { %v1644_v63 = vadd.f32 %v3582_v31, %v1643_v20  ;;  %v2732_v58 = vpop.f32.mrb[54].mxu1  ;;  %2743 = vmatprep.subr.msk.bf16.mxu1 %vm3622_vm2, %v2741_v36 }
 0x380   :  { %v1655_v2 = vadd.f32 %v2732_v58, %v3582_v31  ;;  %v1646_v16 = vpop.f32.mrb[55].mxu1  ;;  %2746 = vmatpush3.bf16.xpose.msk.msra.mxu1 %vm3622_vm2, %v3590_v32  ;;  %v1712_v0 = vmax.f32 %v1652_v19, 0.0 }
 0x381   :  { %v1647_v28 = vadd.f32 %v3582_v31, %v1646_v16  ;;  %2749 = vmatprep.subr.msk.bf16.mxu1 %vm3622_vm2, %v2747_v22  ;;  %v1710_v62 = vmax.f32 %v1644_v63, 0.0 }
 0x382   :  { %v1713_v24 = vmax.f32 %v1655_v2, 0.0 }
 0x383   :  { %v1711_v23 = vmax.f32 %v1647_v28, 0.0 }
 0x384   :  { %v2759_v41 = vpack.c.bf16 %v1713_v24, %v1712_v0 }
 0x385   :  { %v2753_v50 = vpack.c.bf16 %v1711_v23, %v1710_v62  ;;  %v2735_v30 = vpop.f32.mrb[56].mxu1 }
 0x386   :  { %v1668_v36 = vadd.f32 %v2735_v30, %v3582_v31  ;;  %v1659_v58 = vpop.f32.mrb[57].mxu1 }
 0x387   :  { %v1660_v20 = vadd.f32 %v3582_v31, %v1659_v58  ;;  %v2736_v18 = vpop.f32.mrb[58].mxu1 }
 0x388   :  { %v1671_v32 = vadd.f32 %v2736_v18, %v3582_v31  ;;  %v1662_v48 = vpop.f32.mrb[59].mxu1  ;;  %2752 = vmatpush3.bf16.xpose.msk.msra.mxu1 %vm3622_vm2, %v3588_v17  ;;  %v1716_v19 = vmax.f32 %v1668_v36, 0.0 }
 0x389   :  { %v1663_v22 = vadd.f32 %v3582_v31, %v1662_v48  ;;  %2755 = vmatprep.subr.msk.bf16.mxu1 %vm3622_vm2, %v2753_v50  ;;  %v1714_v2 = vmax.f32 %v1660_v20, 0.0 }
 0x38a   :  { %v1717_v63 = vmax.f32 %v1671_v32, 0.0 }
 0x38b   :  { %v1715_v16 = vmax.f32 %v1663_v22, 0.0 }
 0x38c   :  { %v2771_v28 = vpack.c.bf16 %v1717_v63, %v1716_v19 }
 0x38d   :  { %v2765_v0 = vpack.c.bf16 %v1715_v16, %v1714_v2  ;;  %v2739_v24 = vpop.f32.mrb[60].mxu1 }
 0x38e   :  { %v1684_v62 = vadd.f32 %v2739_v24, %v3582_v31  ;;  %v1675_v18 = vpop.f32.mrb[61].mxu1 }
 0x38f   :  { %v1676_v23 = vadd.f32 %v3582_v31, %v1675_v18  ;;  %v2740_v30 = vpop.f32.mrb[62].mxu1 }
 0x390   :  { %v1687_v17 = vadd.f32 %v2740_v30, %v3582_v31  ;;  %v1678_v58 = vpop.f32.mrb[63].mxu1  ;;  %2758 = vmatpush3.bf16.xpose.msk.msra.mxu1 %vm3622_vm2, %v3598_v13  ;;  %v1720_v50 = vmax.f32 %v1684_v62, 0.0 }
 0x391   :  { %v1679_v48 = vadd.f32 %v3582_v31, %v1678_v58  ;;  %2761 = vmatprep.subr.msk.bf16.mxu1 %vm3622_vm2, %v2759_v41  ;;  %v1718_v20 = vmax.f32 %v1676_v23, 0.0  ;;  %v1722_v31 = vld [vmem:[%s3778_s6] sm:$0xff] }
 0x392   :  { %v1721_v36 = vmax.f32 %v1687_v17, 0.0 }
 0x393   :  { %v1719_v32 = vmax.f32 %v1679_v48, 0.0 }
 0x394   :  { %v2783_v22 = vpack.c.bf16 %v1721_v36, %v1720_v50 }
 0x395   :  { %v2777_v19 = vpack.c.bf16 %v1719_v32, %v1718_v20 }
 0x398   :  { %2764 = vmatpush3.bf16.xpose.msk.msra.mxu1 %vm3622_vm2, %v3596_v34 }
 0x399   :  { %2767 = vmatprep.subr.msk.bf16.mxu1 %vm3622_vm2, %v2765_v0 }
 0x3a0   :  { %2770 = vmatpush3.bf16.xpose.msk.msra.mxu1 %vm3622_vm2, %v3606_v25 }
 0x3a1   :  { %2773 = vmatprep.subr.msk.bf16.mxu1 %vm3622_vm2, %v2771_v28 }
 0x3a8   :  { %2776 = vmatpush3.bf16.xpose.msk.msra.mxu1 %vm3622_vm2, %v3604_v43 }
 0x3a9   :  { %2779 = vmatprep.subr.msk.bf16.mxu1 %vm3622_vm2, %v2777_v19 }
 0x3b0   :  { %2782 = vmatpush3.bf16.xpose.msk.msra.mxu1 %vm3622_vm2, %v3614_v8 }
 0x3b1   :  { %2785 = vmatprep.subr.msk.bf16.mxu1 %vm3622_vm2, %v2783_v22 }
 0x3b8   :  { %2788 = vmatpush3.bf16.xpose.msk.msra.mxu1 %vm3622_vm2, %v3612_v7 }
 0x3b9   :  { %2791 = vmatprep.subr.msk.bf16.mxu1 %vm3622_vm2, %v2789_v12 }
 0x3bf   :  { %2506 = vmatmul.mubr.msk.f32.vlgmr.msra.gmra.mrb[64].mxu1 %vm913_vm0, %v3575_v6 }
 0x3c0   :  { %2794 = vmatpush3.bf16.xpose.msk.msra.mxu1 %vm3622_vm2, %v2792_v49  ;;  %2539 = vmatprep.mubr.msk.f32.mxu1 %vm913_vm0, %v1722_v31  ;;  %v3787_v49 = vpack.c.bf16 %v3472_v9, %v3466_v59 }
 0x3c1   :  { %2797 = vmatprep.subr.msk.bf16.mxu1 %vm3622_vm2, %v2795_v51 }
 0x3c8   :  { %2800 = vmatpush3.bf16.xpose.msk.msra.mxu1 %vm3622_vm2, %v3784_v45 }
 0x3c9   :  { %2803 = vmatprep.subr.msk.bf16.mxu1 %vm3622_vm2, %v3785_v39 }
 0x3d0   :  { %2806 = vmatpush3.bf16.xpose.msk.msra.mxu1 %vm3622_vm2, %v3786_v46 }
 0x3d1   :  { %2809 = vmatprep.subr.msk.bf16.mxu1 %vm3622_vm2, %v3787_v49 }
 0x3d8   :  { %2812 = vmatpush3.bf16.xpose.msk.msra.mxu1 %vm3622_vm2, %v3788_v37 }
 0x3d9   :  { %2815 = vmatprep.subr.msk.bf16.mxu1 %vm3622_vm2, %v3789_v42 }
 0x3e0   :  { %2818 = vmatpush3.bf16.xpose.msk.msra.mxu1 %vm3622_vm2, %v3790_v54 }
 0x3e1   :  { %2821 = vmatprep.subr.msk.bf16.mxu1 %vm3622_vm2, %v3791_v61 }
 0x3e8   :  { %2824 = vmatpush3.bf16.xpose.msk.msra.mxu1 %vm3622_vm2, %v3792_v52 }
 0x3e9   :  { %2827 = vmatprep.subr.msk.bf16.mxu1 %vm3622_vm2, %v3793_v47 }
 0x3f0   :  { %2830 = vmatpush3.bf16.xpose.msk.msra.mxu1 %vm3622_vm2, %v3794_v5 }
 0x3f1   :  { %2833 = vmatprep.subr.msk.bf16.mxu1 %vm3622_vm2, %v3795_v21 }
 0x3f8   :  { %2836 = vmatpush3.bf16.xpose.msk.msra.mxu1 %vm3622_vm2, %v3796_v3 }
 0x3ff   :  { %2540 = vmatmul.mubr.msk.f32.vlgmr.msra.gmra.mrb[64].mxu1 %vm913_vm0, %v1722_v31 }
 0x4d2   :  { %v2059_v57 = vpop.f32.mrb[64].mxu1 }
 0x4d3   :  { %v2074_v51 = vadd.f32 %v2073_v53, %v2059_v57  ;;  %v2061_v12 = vpop.f32.mrb[65].mxu1 }
 0x4d4   :  { %v2075_v59 = vadd.f32 %v2073_v53, %v2061_v12 }
 0x4d5   :  { %v2371_v60 = vmul.f32 -1.442695, %v2074_v51 }
 0x4d6   :  { %v2372_v9 = vmul.f32 -1.442695, %v2075_v59 }
 0x4d7   :  { %2891 = vpow2.f32 %v2371_v60 }
 0x4d8   :  { %2893 = vpow2.f32 %v2372_v9 }
 0x4e1   :  { %v2892_v1 = vpop.eup %2891 }
 0x4e2   :  { %v2894_v27 = vpop.eup %2893  ;;  %v2082_v35 = vadd.f32 1.0, %v2892_v1 }
 0x4e3   :  { %v2083_v4 = vadd.f32 1.0, %v2894_v27 }
 0x4e4   :  { %2895 = vrcp.f32 %v2082_v35 }
 0x4e5   :  { %2897 = vrcp.f32 %v2083_v4 }
 0x4ee   :  { %v2896_v55 = vpop.eup %2895 }
 0x4ef   :  { %v2898_v14 = vpop.eup %2897 }
 0x4f0   :  { %v2090_v15 = vcombine.low %v2896_v55, %v2898_v14 }
 0x4f2   :  { %v2097_v6 = vrot.slane %v2090_v15, %v2096_v56 }
 0x4f4   :  { %v2104_v34 = vrot.slane %v2097_v6, %v2096_v56 }
 0x4f6   :  { %2110 = vst.msk [vmem:[%s3779_s9] sm:$0x3] %vm2108_vm3, %v2104_v34 }

</bundles_post_ra>
